<compile_context>
chip_gen: v6e
topology: v6e:2x2x1
jax: 0.10.0
libtpu: 0.0.40
codegen_flags: <defaults>
</compile_context>

<pallas_src>
import math
import functools

import jax
import jax.numpy as jnp
from jax.experimental import pallas as pl
from jax.experimental.pallas import tpu as pltpu


def _layer_norm(x, w, b, eps=1e-5):
    mu = jnp.mean(x, axis=-1, keepdims=True)
    var = jnp.mean((x - mu) ** 2, axis=-1, keepdims=True)
    return (x - mu) * jax.lax.rsqrt(var + eps) * w + b


def _gelu_tanh(x):
    # GELU(approximate='tanh')
    c = math.sqrt(2.0 / math.pi)
    return 0.5 * x * (1.0 + jnp.tanh(c * (x + 0.044715 * x * x * x)))


def block_kernel(x_ref,
                 ln1_w_ref, ln1_b_ref,
                 w_q_ref, b_q_ref,
                 w_kv_ref, b_kv_ref,
                 w_attn_proj_ref, b_attn_proj_ref,
                 ln2_w_ref, ln2_b_ref,
                 w_fc_ref, b_fc_ref,
                 w_mlp_proj_ref, b_mlp_proj_ref,
                 o_ref,
                 k_scratch, v_scratch,
                 *, n_head, tile_t):
    # x_ref block is (1, T, C): full sequence of one batch element (resident
    # across the whole q-tile axis; only re-DMAed when b changes).
    T, C = x_ref.shape[1], x_ref.shape[2]
    Dh = C // n_head
    scale = 1.0 / math.sqrt(Dh)
    mm = jnp.bfloat16  # matmul operand dtype (MXU peak); accumulate in f32.

    qt = pl.program_id(1)
    q_start = pl.multiple_of(qt * tile_t, tile_t)

    ln1_w = ln1_w_ref[0]
    ln1_b = ln1_b_ref[0]

    # ---- one-time (per batch element) full-sequence LN + K/V projection ----
    # Stored pre-transposed as (H, T, Dh) so per-k-tile access is a plain
    # sublane slice (no per-tile lane-relayout of (T, C) -> (T, H, Dh)).
    @pl.when(qt == 0)
    def _():
        x_full = x_ref[0].astype(jnp.float32)                              # (T, C)
        h_full = _layer_norm(x_full, ln1_w, ln1_b)
        kv = jnp.dot(h_full.astype(mm), w_kv_ref[...],
                     preferred_element_type=jnp.float32) + b_kv_ref[0]     # (T, 2C)
        k = kv[:, :C].reshape(T, n_head, Dh)
        v = kv[:, C:].reshape(T, n_head, Dh)
        k_scratch[...] = jnp.transpose(k, (1, 0, 2)).astype(mm)            # (H, T, Dh)
        v_scratch[...] = jnp.transpose(v, (1, 0, 2)).astype(mm)

    # ---- per q-tile: ln_1 + Q projection ----
    x_q = x_ref[0, pl.ds(q_start, tile_t), :].astype(jnp.float32)          # (tile_t, C)
    h_q = _layer_norm(x_q, ln1_w, ln1_b)
    q = jnp.dot(h_q.astype(mm), w_q_ref[...],
                preferred_element_type=jnp.float32) + b_q_ref[0]           # (tile_t, C)
    q3 = jnp.transpose(q.reshape(tile_t, n_head, Dh), (1, 0, 2)).astype(mm)  # (H, tile_t, Dh)

    # ---- causal attention over k-tiles [0, qt] with online softmax ----
    m0 = jnp.full((n_head, tile_t, 1), -1e30, jnp.float32)
    l0 = jnp.zeros((n_head, tile_t, 1), jnp.float32)
    acc0 = jnp.zeros((n_head, tile_t, Dh), jnp.float32)

    def kv_step(kt, carry):
        m_i, l_i, acc = carry
        k_start = pl.multiple_of(kt * tile_t, tile_t)
        k_tile = k_scratch[:, pl.ds(k_start, tile_t), :]                   # (H, tile_t, Dh)
        v_tile = v_scratch[:, pl.ds(k_start, tile_t), :]

        # Scores MUST stay f32 through mask + exp (-1e30 overflows bf16).
        s = jnp.einsum('hqd,hkd->hqk', q3, k_tile,
                       preferred_element_type=jnp.float32) * scale         # (H, tt, tt)

        # Additive causal mask; all-zero for sub-diagonal k-tiles (kt < qt),
        # only the diagonal tile actually masks anything.
        row = q_start + jax.lax.broadcasted_iota(jnp.int32, (tile_t, tile_t), 0)
        col = k_start + jax.lax.broadcasted_iota(jnp.int32, (tile_t, tile_t), 1)
        mask_add = jnp.where(row >= col, 0.0, -1e30).astype(jnp.float32)
        s = s + mask_add[None, :, :]

        m_new = jnp.maximum(m_i, jnp.max(s, axis=-1, keepdims=True))
        alpha = jnp.exp(m_i - m_new)
        p = jnp.exp(s - m_new)
        l_new = alpha * l_i + jnp.sum(p, axis=-1, keepdims=True)
        acc_new = alpha * acc + jnp.einsum('hqk,hkd->hqd', p.astype(mm), v_tile,
                                           preferred_element_type=jnp.float32)
        return m_new, l_new, acc_new

    m_i, l_i, acc = jax.lax.fori_loop(0, qt + 1, kv_step, (m0, l0, acc0))

    # approx reciprocal (EUP) — intentional ~1e-3-level deviation vs f32 ref.
    attn = acc * pl.reciprocal(l_i, approx=True)                           # (H, tile_t, Dh)
    attn = jnp.transpose(attn, (1, 0, 2)).reshape(tile_t, C)
    attn = jnp.dot(attn.astype(mm), w_attn_proj_ref[...],
                   preferred_element_type=jnp.float32) + b_attn_proj_ref[0]

    # ---- residual 1 ----
    h = x_q + attn

    # ---- ln_2 + MLP ----
    h2 = _layer_norm(h, ln2_w_ref[0], ln2_b_ref[0])
    mlp = jnp.dot(h2.astype(mm), w_fc_ref[...],
                  preferred_element_type=jnp.float32) + b_fc_ref[0]
    mlp = _gelu_tanh(mlp)
    mlp = jnp.dot(mlp.astype(mm), w_mlp_proj_ref[...],
                  preferred_element_type=jnp.float32) + b_mlp_proj_ref[0]

    # ---- residual 2 ----
    o_ref[0] = (h + mlp).astype(o_ref.dtype)


def _vmem_cap_bytes():
    try:
        return int(pltpu.get_tpu_info().vmem_capacity_bytes)
    except Exception:
        return 64 * 1024 * 1024  # conservative (v7x) if the query is unavailable


def _is_v5():
    try:
        return "v5" in jax.devices()[0].device_kind.lower()
    except Exception:
        return True  # conservative


def _vmem_estimate(T, tile_t, C, n_head):
    f32, bf16 = 4, 2
    # TODO(synk): single-buffer the grid-invariant weight specs via
    # pipeline_mode=pl.Buffered(1) (or a one-time manual copy) to drop the 2x
    # factor below; required for large C on v7x's 64 MiB VMEM.
    weights = 2 * (12 * C * C * bf16 + 14 * C * f32)      # double-buffered weight blocks
    io = 2 * T * C * f32 + 2 * tile_t * C * f32           # double-buffered x + out blocks
    kv_scratch = 2 * T * C * bf16                         # (H,T,Dh) K and V in bf16
    inter = (3 * T * C + 12 * tile_t * C + 3 * n_head * tile_t * tile_t) * f32
    return weights + io + kv_scratch + 2 * inter


def _choose_tile_t(T, C, n_head, cap):
    if T <= 128:
        return T
    # v6e/v7x MXUs are 256-wide; prefer tile_t=256 there when VMEM allows.
    max_tile = 128 if _is_v5() else 256
    for cand in (256, 128, 64, 32, 16, 8):
        if cand <= max_tile and T % cand == 0 and \
                _vmem_estimate(T, cand, C, n_head) <= 0.85 * cap:
            return cand
    for cand in (128, 64, 32, 16, 8):
        if T % cand == 0:
            return cand
    return T


def transformer_block(x, params, n_head, tile_t=None):
    B, T, C = x.shape
    Dh = C // n_head
    cap = _vmem_cap_bytes()
    if tile_t is None:
        tile_t = _choose_tile_t(T, C, n_head, cap)
    n_qt = T // tile_t
    mm = jnp.bfloat16

    # Pre-split c_attn into Q and KV halves (avoids in-kernel lane slicing of
    # the weight) and pre-cast matmul weights to bf16 (halves HBM/VMEM).
    w_attn = params["w_attn"]
    b_attn = params["b_attn"]
    weight_args = [
        params["ln1_w"], params["ln1_b"],
        w_attn[:, :C].astype(mm), b_attn[:, :C],
        w_attn[:, C:].astype(mm), b_attn[:, C:],
        params["w_attn_proj"].astype(mm), params["b_attn_proj"],
        params["ln2_w"], params["ln2_b"],
        params["w_fc"].astype(mm), params["b_fc"],
        params["w_mlp_proj"].astype(mm), params["b_mlp_proj"],
    ]

    # TODO(synk): for C >= 2048 on v7x, stream w_fc / w_mlp_proj tiles from HBM
    # (extra grid axis or pltpu.emit_pipeline) instead of keeping them whole in VMEM.
    def full_spec(arr):
        nd = arr.ndim
        return pl.BlockSpec(arr.shape, lambda b, t, _nd=nd: (0,) * _nd)

    in_specs = [pl.BlockSpec((1, T, C), lambda b, t: (b, 0, 0))]
    in_specs += [full_spec(w) for w in weight_args]

    floor = min(32 * 1024 * 1024, int(0.85 * cap))
    vmem_limit = int(min(int(0.85 * cap),
                         max(floor, _vmem_estimate(T, tile_t, C, n_head))))

    # Advisory cost estimate so XLA can schedule surrounding ops (e.g. the next
    # layer's weight prefetch) around this custom call.
    flops = int(B * (2 * T * C * C                      # Q projection
                     + 2 * T * C * 2 * C                # K/V projection (once per b)
                     + 2 * T * C * C                    # attention output projection
                     + 2 * 2 * T * (T // 2 + tile_t) * C   # causal QK^T + P.V
                     + 2 * 2 * T * C * 4 * C))          # MLP fc + proj
    transcend = int(B * (T * (T // 2 + tile_t) + T * 4 * C))
    bytes_accessed = int(2 * x.size * x.dtype.itemsize
                         + sum(int(w.size) * w.dtype.itemsize for w in weight_args))

    # TODO(synk): on v7x with B < 2 the "arbitrary" t axis leaves one TensorCore
    # idle; split the q-tile range across cores via core_map in that regime.
    return pl.pallas_call(
        functools.partial(block_kernel, n_head=n_head, tile_t=tile_t),
        out_shape=jax.ShapeDtypeStruct((B, T, C), x.dtype),
        grid_spec=pltpu.PrefetchScalarGridSpec(
            num_scalar_prefetch=0,
            grid=(B, n_qt),
            in_specs=in_specs,
            out_specs=pl.BlockSpec((1, tile_t, C), lambda b, t: (b, t, 0)),
            scratch_shapes=[pltpu.VMEM((n_head, T, Dh), mm),   # K (persists across t axis)
                            pltpu.VMEM((n_head, T, Dh), mm)],  # V
        ),
        compiler_params=pltpu.CompilerParams(
            dimension_semantics=("parallel", "arbitrary"),
            vmem_limit_bytes=vmem_limit),
        cost_estimate=pl.CostEstimate(flops=flops, transcendentals=transcend,
                                      bytes_accessed=bytes_accessed),
    )(x, *weight_args)


def reference_block(x, params, n_head):
    B, T, C = x.shape
    Dh = C // n_head

    def ln(v, w, b):
        mu = jnp.mean(v, -1, keepdims=True)
        var = jnp.mean((v - mu) ** 2, -1, keepdims=True)
        return (v - mu) * jax.lax.rsqrt(var + 1e-5) * w[0] + b[0]

    h = ln(x, params["ln1_w"], params["ln1_b"])
    qkv = h @ params["w_attn"] + params["b_attn"][0]
    q, k, v = jnp.split(qkv, 3, axis=-1)
    q = q.reshape(B, T, n_head, Dh).transpose(0, 2, 1, 3)
    k = k.reshape(B, T, n_head, Dh).transpose(0, 2, 1, 3)
    v = v.reshape(B, T, n_head, Dh).transpose(0, 2, 1, 3)
    s = (q @ jnp.swapaxes(k, -1, -2)) / math.sqrt(Dh)
    mask = jnp.tril(jnp.ones((T, T), dtype=bool))
    s = jnp.where(mask, s, -jnp.inf)
    p = jax.nn.softmax(s, axis=-1)
    a = (p @ v).transpose(0, 2, 1, 3).reshape(B, T, C)
    a = a @ params["w_attn_proj"] + params["b_attn_proj"][0]
    h = x + a
    h2 = ln(h, params["ln2_w"], params["ln2_b"])
    m = h2 @ params["w_fc"] + params["b_fc"][0]
    m = jax.nn.gelu(m, approximate=True)
    m = m @ params["w_mlp_proj"] + params["b_mlp_proj"][0]
    return h + m


if __name__ == "__main__":
    # Small config consistent with the module (block_size >= T, bias=True).
    # T=16 with a forced tile_t=8 exercises the multi-q-tile path:
    # KV-in-scratch reuse across tiles + causal k-tile limiting.
    B, T, C, n_head = 2, 16, 32, 4

    key = jax.random.PRNGKey(0)
    keys = jax.random.split(key, 8)

    params = {
        "ln1_w": jnp.ones((1, C), jnp.float32),
        "ln1_b": jnp.zeros((1, C), jnp.float32),
        "w_attn": 0.02 * jax.random.normal(keys[0], (C, 3 * C), jnp.float32),
        "b_attn": 0.02 * jax.random.normal(keys[1], (1, 3 * C), jnp.float32),
        "w_attn_proj": 0.02 * jax.random.normal(keys[2], (C, C), jnp.float32),
        "b_attn_proj": 0.02 * jax.random.normal(keys[3], (1, C), jnp.float32),
        "ln2_w": jnp.ones((1, C), jnp.float32),
        "ln2_b": jnp.zeros((1, C), jnp.float32),
        "w_fc": 0.02 * jax.random.normal(keys[4], (C, 4 * C), jnp.float32),
        "b_fc": 0.02 * jax.random.normal(keys[5], (1, 4 * C), jnp.float32),
        "w_mlp_proj": 0.02 * jax.random.normal(keys[6], (4 * C, C), jnp.float32),
        "b_mlp_proj": 0.02 * jax.random.normal(keys[7], (1, C), jnp.float32),
    }

    x = jax.random.normal(jax.random.PRNGKey(42), (B, T, C), jnp.float32)

    out = transformer_block(x, params, n_head, tile_t=8)
    out = jax.block_until_ready(out)

    ref = reference_block(x, params, n_head)
    # bf16 matmul operands + approx reciprocal -> loosen tolerance vs f32 ref.
    assert jnp.allclose(out, ref, atol=2e-2, rtol=2e-2), (
        float(jnp.max(jnp.abs(out - ref))))

    # attn_weights is None since output_attentions=False in this synthetic config.
    print("KERNEL_OK")
</pallas_src>

<mosaic_0001>
module attributes {stable_mosaic.version = 11 : i64} {
  func.func @block_kernel(%arg0: i32, %arg1: i32, %arg2: memref<1x16x32xf32, #tpu.memory_space<vmem>>, %arg3: memref<1x32xf32, #tpu.memory_space<vmem>>, %arg4: memref<1x32xf32, #tpu.memory_space<vmem>>, %arg5: memref<32x32xbf16, #tpu.memory_space<vmem>>, %arg6: memref<1x32xf32, #tpu.memory_space<vmem>>, %arg7: memref<32x64xbf16, #tpu.memory_space<vmem>>, %arg8: memref<1x64xf32, #tpu.memory_space<vmem>>, %arg9: memref<32x32xbf16, #tpu.memory_space<vmem>>, %arg10: memref<1x32xf32, #tpu.memory_space<vmem>>, %arg11: memref<1x32xf32, #tpu.memory_space<vmem>>, %arg12: memref<1x32xf32, #tpu.memory_space<vmem>>, %arg13: memref<32x128xbf16, #tpu.memory_space<vmem>>, %arg14: memref<1x128xf32, #tpu.memory_space<vmem>>, %arg15: memref<128x32xbf16, #tpu.memory_space<vmem>>, %arg16: memref<1x32xf32, #tpu.memory_space<vmem>>, %arg17: memref<1x8x32xf32, #tpu.memory_space<vmem>>, %arg18: memref<4x16x8xbf16, #tpu.memory_space<vmem>>, %arg19: memref<4x16x8xbf16, #tpu.memory_space<vmem>>) attributes {dimension_semantics = [#tpu.dimension_semantics<parallel>, #tpu.dimension_semantics<arbitrary>], iteration_bounds = array<i64: 2, 2>, scalar_prefetch = 0 : i64, scratch_operands = 2 : i64, tpu.core_type = #tpu.core_type<tc>, window_params = [{transform_indices = @transform_0, window_bounds = array<i64: 1, 16, 32>}, {pipeline_mode = #tpu.pipeline_mode<synchronous>, transform_indices = @transform_1, window_bounds = array<i64: 1, 32>}, {pipeline_mode = #tpu.pipeline_mode<synchronous>, transform_indices = @transform_2, window_bounds = array<i64: 1, 32>}, {pipeline_mode = #tpu.pipeline_mode<synchronous>, transform_indices = @transform_3, window_bounds = array<i64: 32, 32>}, {pipeline_mode = #tpu.pipeline_mode<synchronous>, transform_indices = @transform_4, window_bounds = array<i64: 1, 32>}, {pipeline_mode = #tpu.pipeline_mode<synchronous>, transform_indices = @transform_5, window_bounds = array<i64: 32, 64>}, {pipeline_mode = #tpu.pipeline_mode<synchronous>, transform_indices = @transform_6, window_bounds = array<i64: 1, 64>}, {pipeline_mode = #tpu.pipeline_mode<synchronous>, transform_indices = @transform_7, window_bounds = array<i64: 32, 32>}, {pipeline_mode = #tpu.pipeline_mode<synchronous>, transform_indices = @transform_8, window_bounds = array<i64: 1, 32>}, {pipeline_mode = #tpu.pipeline_mode<synchronous>, transform_indices = @transform_9, window_bounds = array<i64: 1, 32>}, {pipeline_mode = #tpu.pipeline_mode<synchronous>, transform_indices = @transform_10, window_bounds = array<i64: 1, 32>}, {pipeline_mode = #tpu.pipeline_mode<synchronous>, transform_indices = @transform_11, window_bounds = array<i64: 32, 128>}, {pipeline_mode = #tpu.pipeline_mode<synchronous>, transform_indices = @transform_12, window_bounds = array<i64: 1, 128>}, {pipeline_mode = #tpu.pipeline_mode<synchronous>, transform_indices = @transform_13, window_bounds = array<i64: 128, 32>}, {pipeline_mode = #tpu.pipeline_mode<synchronous>, transform_indices = @transform_14, window_bounds = array<i64: 1, 32>}, {transform_indices = @transform_15, window_bounds = array<i64: 1, 8, 32>}]} {
    %c8_i32 = arith.constant 8 : i32
    %0 = arith.muli %arg1, %c8_i32 : i32
    %1 = tpu.assume_multiple %0, 8 : i32
    %c0 = arith.constant 0 : index
    %c0_0 = arith.constant 0 : index
    %2 = vector.load %arg3[%c0, %c0_0] : memref<1x32xf32, #tpu.memory_space<vmem>>, vector<1x32xf32>
    %3 = vector.shape_cast %2 : vector<1x32xf32> to vector<32xf32>
    %c0_1 = arith.constant 0 : index
    %c0_2 = arith.constant 0 : index
    %4 = vector.load %arg4[%c0_1, %c0_2] : memref<1x32xf32, #tpu.memory_space<vmem>>, vector<1x32xf32>
    %5 = vector.shape_cast %4 : vector<1x32xf32> to vector<32xf32>
    %c0_i32 = arith.constant 0 : i32
    %6 = arith.cmpi eq, %arg1, %c0_i32 : i32
    %7 = arith.extui %6 : i1 to i32
    %c0_i32_3 = arith.constant 0 : i32
    %8 = arith.cmpi ne, %7, %c0_i32_3 : i32
    scf.if %8 {
      %c0_51 = arith.constant 0 : index
      %c0_52 = arith.constant 0 : index
      %c0_53 = arith.constant 0 : index
      %129 = vector.load %arg2[%c0_51, %c0_52, %c0_53] : memref<1x16x32xf32, #tpu.memory_space<vmem>>, vector<1x16x32xf32>
      %130 = vector.shape_cast %129 : vector<1x16x32xf32> to vector<16x32xf32>
      %cst_54 = arith.constant dense<0.000000e+00> : vector<16xf32>
      %131 = vector.multi_reduction <add>, %130, %cst_54 [1] : vector<16x32xf32> to vector<16xf32>
      %132 = vector.shape_cast %131 : vector<16xf32> to vector<16x1xf32>
      %cst_55 = arith.constant 3.200000e+01 : f32
      %133 = vector.broadcast %cst_55 : f32 to vector<16x1xf32>
      %134 = arith.divf %132, %133 : vector<16x1xf32>
      %135 = vector.broadcast %134 : vector<16x1xf32> to vector<16x32xf32>
      %136 = arith.subf %130, %135 : vector<16x32xf32>
      %137 = arith.mulf %136, %136 : vector<16x32xf32>
      %cst_56 = arith.constant dense<0.000000e+00> : vector<16xf32>
      %138 = vector.multi_reduction <add>, %137, %cst_56 [1] : vector<16x32xf32> to vector<16xf32>
      %139 = vector.shape_cast %138 : vector<16xf32> to vector<16x1xf32>
      %cst_57 = arith.constant 3.200000e+01 : f32
      %140 = vector.broadcast %cst_57 : f32 to vector<16x1xf32>
      %141 = arith.divf %139, %140 : vector<16x1xf32>
      %142 = vector.broadcast %134 : vector<16x1xf32> to vector<16x32xf32>
      %143 = arith.subf %130, %142 : vector<16x32xf32>
      %cst_58 = arith.constant 9.99999974E-6 : f32
      %144 = vector.broadcast %cst_58 : f32 to vector<16x1xf32>
      %145 = arith.addf %141, %144 : vector<16x1xf32>
      %146 = math.rsqrt %145 : vector<16x1xf32>
      %147 = vector.broadcast %146 : vector<16x1xf32> to vector<16x32xf32>
      %148 = arith.mulf %143, %147 : vector<16x32xf32>
      %149 = vector.shape_cast %3 : vector<32xf32> to vector<1x32xf32>
      %150 = vector.broadcast %149 : vector<1x32xf32> to vector<16x32xf32>
      %151 = arith.mulf %148, %150 : vector<16x32xf32>
      %152 = vector.shape_cast %5 : vector<32xf32> to vector<1x32xf32>
      %153 = vector.broadcast %152 : vector<1x32xf32> to vector<16x32xf32>
      %154 = arith.addf %151, %153 : vector<16x32xf32>
      %155 = arith.truncf %154 : vector<16x32xf32> to vector<16x32xbf16>
      %c0_59 = arith.constant 0 : index
      %c0_60 = arith.constant 0 : index
      %156 = vector.load %arg7[%c0_59, %c0_60] : memref<32x64xbf16, #tpu.memory_space<vmem>>, vector<32x64xbf16>
      %cst_61 = arith.constant dense<0.000000e+00> : vector<16x64xf32>
      %157 = tpu.matmul %155, %156, %cst_61 {dimension_numbers = #tpu.dot_dimension_numbers<[1], [0], [0], [1], [0, 0, 1, 1], [], []>} : vector<16x32xbf16>, vector<32x64xbf16>, vector<16x64xf32> -> vector<16x64xf32>
      %c0_62 = arith.constant 0 : index
      %c0_63 = arith.constant 0 : index
      %158 = vector.load %arg8[%c0_62, %c0_63] : memref<1x64xf32, #tpu.memory_space<vmem>>, vector<1x64xf32>
      %159 = vector.shape_cast %158 : vector<1x64xf32> to vector<64xf32>
      %160 = vector.shape_cast %159 : vector<64xf32> to vector<1x64xf32>
      %161 = vector.broadcast %160 : vector<1x64xf32> to vector<16x64xf32>
      %162 = arith.addf %157, %161 : vector<16x64xf32>
      %163 = vector.extract_strided_slice %162 {offsets = [0, 0], sizes = [16, 32], strides = [1, 1]} : vector<16x64xf32> to vector<16x32xf32>
      %164 = vector.shape_cast %163 : vector<16x32xf32> to vector<16x4x8xf32>
      %165 = vector.extract_strided_slice %162 {offsets = [0, 32], sizes = [16, 32], strides = [1, 1]} : vector<16x64xf32> to vector<16x32xf32>
      %166 = vector.shape_cast %165 : vector<16x32xf32> to vector<16x4x8xf32>
      %167 = tpu.transpose %164, [1, 0, 2] : vector<16x4x8xf32> -> vector<4x16x8xf32>
      %168 = arith.truncf %167 : vector<4x16x8xf32> to vector<4x16x8xbf16>
      %c0_64 = arith.constant 0 : index
      %c0_65 = arith.constant 0 : index
      %c0_66 = arith.constant 0 : index
      %169 = vector.load %arg18[%c0_64, %c0_65, %c0_66] : memref<4x16x8xbf16, #tpu.memory_space<vmem>>, vector<4x16x8xbf16>
      tpu.vector_store %arg18[%c0_64, %c0_65, %c0_66], %168 {strides = array<i32>} : memref<4x16x8xbf16, #tpu.memory_space<vmem>>, vector<4x16x8xbf16>,
      %170 = tpu.transpose %166, [1, 0, 2] : vector<16x4x8xf32> -> vector<4x16x8xf32>
      %171 = arith.truncf %170 : vector<4x16x8xf32> to vector<4x16x8xbf16>
      %c0_67 = arith.constant 0 : index
      %c0_68 = arith.constant 0 : index
      %c0_69 = arith.constant 0 : index
      %172 = vector.load %arg19[%c0_67, %c0_68, %c0_69] : memref<4x16x8xbf16, #tpu.memory_space<vmem>>, vector<4x16x8xbf16>
      tpu.vector_store %arg19[%c0_67, %c0_68, %c0_69], %171 {strides = array<i32>} : memref<4x16x8xbf16, #tpu.memory_space<vmem>>, vector<4x16x8xbf16>,
    } else {
    }
    %c0_4 = arith.constant 0 : index
    %9 = arith.index_cast %1 : i32 to index
    %c0_5 = arith.constant 0 : index
    %10 = vector.load %arg2[%c0_4, %9, %c0_5] : memref<1x16x32xf32, #tpu.memory_space<vmem>>, vector<1x8x32xf32>
    %11 = vector.shape_cast %10 : vector<1x8x32xf32> to vector<8x32xf32>
    %cst = arith.constant dense<0.000000e+00> : vector<8xf32>
    %12 = vector.multi_reduction <add>, %11, %cst [1] : vector<8x32xf32> to vector<8xf32>
    %13 = vector.shape_cast %12 : vector<8xf32> to vector<8x1xf32>
    %cst_6 = arith.constant 3.200000e+01 : f32
    %14 = vector.broadcast %cst_6 : f32 to vector<8x1xf32>
    %15 = arith.divf %13, %14 : vector<8x1xf32>
    %16 = vector.broadcast %15 : vector<8x1xf32> to vector<8x32xf32>
    %17 = arith.subf %11, %16 : vector<8x32xf32>
    %18 = arith.mulf %17, %17 : vector<8x32xf32>
    %cst_7 = arith.constant dense<0.000000e+00> : vector<8xf32>
    %19 = vector.multi_reduction <add>, %18, %cst_7 [1] : vector<8x32xf32> to vector<8xf32>
    %20 = vector.shape_cast %19 : vector<8xf32> to vector<8x1xf32>
    %cst_8 = arith.constant 3.200000e+01 : f32
    %21 = vector.broadcast %cst_8 : f32 to vector<8x1xf32>
    %22 = arith.divf %20, %21 : vector<8x1xf32>
    %23 = vector.broadcast %15 : vector<8x1xf32> to vector<8x32xf32>
    %24 = arith.subf %11, %23 : vector<8x32xf32>
    %cst_9 = arith.constant 9.99999974E-6 : f32
    %25 = vector.broadcast %cst_9 : f32 to vector<8x1xf32>
    %26 = arith.addf %22, %25 : vector<8x1xf32>
    %27 = math.rsqrt %26 : vector<8x1xf32>
    %28 = vector.broadcast %27 : vector<8x1xf32> to vector<8x32xf32>
    %29 = arith.mulf %24, %28 : vector<8x32xf32>
    %30 = vector.shape_cast %3 : vector<32xf32> to vector<1x32xf32>
    %31 = vector.broadcast %30 : vector<1x32xf32> to vector<8x32xf32>
    %32 = arith.mulf %29, %31 : vector<8x32xf32>
    %33 = vector.shape_cast %5 : vector<32xf32> to vector<1x32xf32>
    %34 = vector.broadcast %33 : vector<1x32xf32> to vector<8x32xf32>
    %35 = arith.addf %32, %34 : vector<8x32xf32>
    %36 = arith.truncf %35 : vector<8x32xf32> to vector<8x32xbf16>
    %c0_10 = arith.constant 0 : index
    %c0_11 = arith.constant 0 : index
    %37 = vector.load %arg5[%c0_10, %c0_11] : memref<32x32xbf16, #tpu.memory_space<vmem>>, vector<32x32xbf16>
    %cst_12 = arith.constant dense<0.000000e+00> : vector<8x32xf32>
    %38 = tpu.matmul %36, %37, %cst_12 {dimension_numbers = #tpu.dot_dimension_numbers<[1], [0], [0], [1], [0, 0, 1, 1], [], []>} : vector<8x32xbf16>, vector<32x32xbf16>, vector<8x32xf32> -> vector<8x32xf32>
    %c0_13 = arith.constant 0 : index
    %c0_14 = arith.constant 0 : index
    %39 = vector.load %arg6[%c0_13, %c0_14] : memref<1x32xf32, #tpu.memory_space<vmem>>, vector<1x32xf32>
    %40 = vector.shape_cast %39 : vector<1x32xf32> to vector<32xf32>
    %41 = vector.shape_cast %40 : vector<32xf32> to vector<1x32xf32>
    %42 = vector.broadcast %41 : vector<1x32xf32> to vector<8x32xf32>
    %43 = arith.addf %38, %42 : vector<8x32xf32>
    %44 = vector.shape_cast %43 : vector<8x32xf32> to vector<8x4x8xf32>
    %45 = tpu.transpose %44, [1, 0, 2] : vector<8x4x8xf32> -> vector<4x8x8xf32>
    %46 = arith.truncf %45 : vector<4x8x8xf32> to vector<4x8x8xbf16>
    %cst_15 = arith.constant -1.000000e+30 : f32
    %47 = vector.broadcast %cst_15 : f32 to vector<4x8x1xf32>
    %cst_16 = arith.constant 0.000000e+00 : f32
    %48 = vector.broadcast %cst_16 : f32 to vector<4x8x1xf32>
    %cst_17 = arith.constant 0.000000e+00 : f32
    %49 = vector.broadcast %cst_17 : f32 to vector<4x8x8xf32>
    %c1_i32 = arith.constant 1 : i32
    %50 = arith.addi %arg1, %c1_i32 : i32
    %c0_i32_18 = arith.constant 0 : i32
    %51 = arith.subi %50, %c0_i32_18 : i32
    %52 = arith.addi %c0_i32_18, %51 : i32
    %c1_i32_19 = arith.constant 1 : i32
    %53:3 = scf.for %arg20 = %c0_i32_18 to %52 step %c1_i32_19 iter_args(%arg21 = %47, %arg22 = %48, %arg23 = %49) -> (vector<4x8x1xf32>, vector<4x8x1xf32>, vector<4x8x8xf32>)  : i32 {
      %c8_i32_51 = arith.constant 8 : i32
      %129 = arith.muli %arg20, %c8_i32_51 : i32
      %130 = tpu.assume_multiple %129, 8 : i32
      %c0_52 = arith.constant 0 : index
      %131 = arith.index_cast %130 : i32 to index
      %c0_53 = arith.constant 0 : index
      %132 = vector.load %arg18[%c0_52, %131, %c0_53] : memref<4x16x8xbf16, #tpu.memory_space<vmem>>, vector<4x8x8xbf16>
      %c0_54 = arith.constant 0 : index
      %133 = arith.index_cast %130 : i32 to index
      %c0_55 = arith.constant 0 : index
      %134 = vector.load %arg19[%c0_54, %133, %c0_55] : memref<4x16x8xbf16, #tpu.memory_space<vmem>>, vector<4x8x8xbf16>
      "tpu.trace_start"() <{level = 10 : i32, message = "hqd,hkd->hqk"}> : () -> ()
      %cst_56 = arith.constant dense<0.000000e+00> : vector<4x8x8xf32>
      %135 = tpu.matmul %46, %132, %cst_56 {dimension_numbers = #tpu.dot_dimension_numbers<[2], [2], [1], [1], [0, 0, 0, 1, 1, 1], [0], [0]>} : vector<4x8x8xbf16>, vector<4x8x8xbf16>, vector<4x8x8xf32> -> vector<4x8x8xf32>
      "tpu.trace_stop"() : () -> ()
      %cst_57 = arith.constant 0.353553385 : f32
      %136 = vector.broadcast %cst_57 : f32 to vector<4x8x8xf32>
      %137 = arith.mulf %135, %136 : vector<4x8x8xf32>
      %138 = tpu.iota {dimensions = array<i32: 0>} : vector<8x8xi32>
      %139 = vector.broadcast %1 : i32 to vector<8x8xi32>
      %140 = arith.addi %139, %138 : vector<8x8xi32>
      %141 = tpu.iota {dimensions = array<i32: 1>} : vector<8x8xi32>
      %142 = vector.broadcast %130 : i32 to vector<8x8xi32>
      %143 = arith.addi %142, %141 : vector<8x8xi32>
      %144 = arith.cmpi sge, %140, %143 : vector<8x8xi32>
      %cst_58 = arith.constant 0.000000e+00 : f32
      %cst_59 = arith.constant -1.000000e+30 : f32
      %145 = vector.broadcast %cst_58 : f32 to vector<8x8xf32>
      %146 = vector.broadcast %cst_59 : f32 to vector<8x8xf32>
      %147 = arith.select %144, %145, %146 : vector<8x8xi1>, vector<8x8xf32>
      %148 = vector.shape_cast %147 : vector<8x8xf32> to vector<1x8x8xf32>
      %149 = vector.broadcast %148 : vector<1x8x8xf32> to vector<4x8x8xf32>
      %150 = arith.addf %137, %149 : vector<4x8x8xf32>
      %cst_60 = arith.constant dense<0xFF800000> : vector<4x8xf32>
      %151 = vector.multi_reduction <maximumf>, %150, %cst_60 [2] : vector<4x8x8xf32> to vector<4x8xf32>
      %152 = vector.shape_cast %151 : vector<4x8xf32> to vector<4x8x1xf32>
      %153 = arith.maximumf %arg21, %152 : vector<4x8x1xf32>
      %154 = arith.subf %arg21, %153 : vector<4x8x1xf32>
      %155 = math.exp %154 : vector<4x8x1xf32>
      %156 = vector.broadcast %153 : vector<4x8x1xf32> to vector<4x8x8xf32>
      %157 = arith.subf %150, %156 : vector<4x8x8xf32>
      %158 = math.exp %157 : vector<4x8x8xf32>
      %159 = arith.mulf %155, %arg22 : vector<4x8x1xf32>
      %cst_61 = arith.constant dense<0.000000e+00> : vector<4x8xf32>
      %160 = vector.multi_reduction <add>, %158, %cst_61 [2] : vector<4x8x8xf32> to vector<4x8xf32>
      %161 = vector.shape_cast %160 : vector<4x8xf32> to vector<4x8x1xf32>
      %162 = arith.addf %159, %161 : vector<4x8x1xf32>
      %163 = vector.broadcast %155 : vector<4x8x1xf32> to vector<4x8x8xf32>
      %164 = arith.mulf %163, %arg23 : vector<4x8x8xf32>
      %165 = arith.truncf %158 : vector<4x8x8xf32> to vector<4x8x8xbf16>
      "tpu.trace_start"() <{level = 10 : i32, message = "hqk,hkd->hqd"}> : () -> ()
      %cst_62 = arith.constant dense<0.000000e+00> : vector<4x8x8xf32>
      %166 = tpu.matmul %165, %134, %cst_62 {dimension_numbers = #tpu.dot_dimension_numbers<[2], [1], [1], [2], [0, 0, 0, 1, 1, 2], [0], [0]>} : vector<4x8x8xbf16>, vector<4x8x8xbf16>, vector<4x8x8xf32> -> vector<4x8x8xf32>
      "tpu.trace_stop"() : () -> ()
      %167 = arith.addf %164, %166 : vector<4x8x8xf32>
      scf.yield %153, %162, %167 : vector<4x8x1xf32>, vector<4x8x1xf32>, vector<4x8x8xf32>
    }
    %54 = tpu.reciprocal %53#1 {approx = true} : vector<4x8x1xf32> -> vector<4x8x1xf32>
    %55 = vector.broadcast %54 : vector<4x8x1xf32> to vector<4x8x8xf32>
    %56 = arith.mulf %53#2, %55 : vector<4x8x8xf32>
    %57 = tpu.transpose %56, [1, 0, 2] : vector<4x8x8xf32> -> vector<8x4x8xf32>
    %58 = vector.shape_cast %57 : vector<8x4x8xf32> to vector<8x32xf32>
    %59 = arith.truncf %58 : vector<8x32xf32> to vector<8x32xbf16>
    %c0_20 = arith.constant 0 : index
    %c0_21 = arith.constant 0 : index
    %60 = vector.load %arg9[%c0_20, %c0_21] : memref<32x32xbf16, #tpu.memory_space<vmem>>, vector<32x32xbf16>
    %cst_22 = arith.constant dense<0.000000e+00> : vector<8x32xf32>
    %61 = tpu.matmul %59, %60, %cst_22 {dimension_numbers = #tpu.dot_dimension_numbers<[1], [0], [0], [1], [0, 0, 1, 1], [], []>} : vector<8x32xbf16>, vector<32x32xbf16>, vector<8x32xf32> -> vector<8x32xf32>
    %c0_23 = arith.constant 0 : index
    %c0_24 = arith.constant 0 : index
    %62 = vector.load %arg10[%c0_23, %c0_24] : memref<1x32xf32, #tpu.memory_space<vmem>>, vector<1x32xf32>
    %63 = vector.shape_cast %62 : vector<1x32xf32> to vector<32xf32>
    %64 = vector.shape_cast %63 : vector<32xf32> to vector<1x32xf32>
    %65 = vector.broadcast %64 : vector<1x32xf32> to vector<8x32xf32>
    %66 = arith.addf %61, %65 : vector<8x32xf32>
    %67 = arith.addf %11, %66 : vector<8x32xf32>
    %c0_25 = arith.constant 0 : index
    %c0_26 = arith.constant 0 : index
    %68 = vector.load %arg11[%c0_25, %c0_26] : memref<1x32xf32, #tpu.memory_space<vmem>>, vector<1x32xf32>
    %69 = vector.shape_cast %68 : vector<1x32xf32> to vector<32xf32>
    %c0_27 = arith.constant 0 : index
    %c0_28 = arith.constant 0 : index
    %70 = vector.load %arg12[%c0_27, %c0_28] : memref<1x32xf32, #tpu.memory_space<vmem>>, vector<1x32xf32>
    %71 = vector.shape_cast %70 : vector<1x32xf32> to vector<32xf32>
    %cst_29 = arith.constant dense<0.000000e+00> : vector<8xf32>
    %72 = vector.multi_reduction <add>, %67, %cst_29 [1] : vector<8x32xf32> to vector<8xf32>
    %73 = vector.shape_cast %72 : vector<8xf32> to vector<8x1xf32>
    %cst_30 = arith.constant 3.200000e+01 : f32
    %74 = vector.broadcast %cst_30 : f32 to vector<8x1xf32>
    %75 = arith.divf %73, %74 : vector<8x1xf32>
    %76 = vector.broadcast %75 : vector<8x1xf32> to vector<8x32xf32>
    %77 = arith.subf %67, %76 : vector<8x32xf32>
    %78 = arith.mulf %77, %77 : vector<8x32xf32>
    %cst_31 = arith.constant dense<0.000000e+00> : vector<8xf32>
    %79 = vector.multi_reduction <add>, %78, %cst_31 [1] : vector<8x32xf32> to vector<8xf32>
    %80 = vector.shape_cast %79 : vector<8xf32> to vector<8x1xf32>
    %cst_32 = arith.constant 3.200000e+01 : f32
    %81 = vector.broadcast %cst_32 : f32 to vector<8x1xf32>
    %82 = arith.divf %80, %81 : vector<8x1xf32>
    %83 = vector.broadcast %75 : vector<8x1xf32> to vector<8x32xf32>
    %84 = arith.subf %67, %83 : vector<8x32xf32>
    %cst_33 = arith.constant 9.99999974E-6 : f32
    %85 = vector.broadcast %cst_33 : f32 to vector<8x1xf32>
    %86 = arith.addf %82, %85 : vector<8x1xf32>
    %87 = math.rsqrt %86 : vector<8x1xf32>
    %88 = vector.broadcast %87 : vector<8x1xf32> to vector<8x32xf32>
    %89 = arith.mulf %84, %88 : vector<8x32xf32>
    %90 = vector.shape_cast %69 : vector<32xf32> to vector<1x32xf32>
    %91 = vector.broadcast %90 : vector<1x32xf32> to vector<8x32xf32>
    %92 = arith.mulf %89, %91 : vector<8x32xf32>
    %93 = vector.shape_cast %71 : vector<32xf32> to vector<1x32xf32>
    %94 = vector.broadcast %93 : vector<1x32xf32> to vector<8x32xf32>
    %95 = arith.addf %92, %94 : vector<8x32xf32>
    %96 = arith.truncf %95 : vector<8x32xf32> to vector<8x32xbf16>
    %c0_34 = arith.constant 0 : index
    %c0_35 = arith.constant 0 : index
    %97 = vector.load %arg13[%c0_34, %c0_35] : memref<32x128xbf16, #tpu.memory_space<vmem>>, vector<32x128xbf16>
    %cst_36 = arith.constant dense<0.000000e+00> : vector<8x128xf32>
    %98 = tpu.matmul %96, %97, %cst_36 {dimension_numbers = #tpu.dot_dimension_numbers<[1], [0], [0], [1], [0, 0, 1, 1], [], []>} : vector<8x32xbf16>, vector<32x128xbf16>, vector<8x128xf32> -> vector<8x128xf32>
    %c0_37 = arith.constant 0 : index
    %c0_38 = arith.constant 0 : index
    %99 = vector.load %arg14[%c0_37, %c0_38] : memref<1x128xf32, #tpu.memory_space<vmem>>, vector<1x128xf32>
    %100 = vector.shape_cast %99 : vector<1x128xf32> to vector<128xf32>
    %101 = vector.shape_cast %100 : vector<128xf32> to vector<1x128xf32>
    %102 = vector.broadcast %101 : vector<1x128xf32> to vector<8x128xf32>
    %103 = arith.addf %98, %102 : vector<8x128xf32>
    %cst_39 = arith.constant 5.000000e-01 : f32
    %104 = vector.broadcast %cst_39 : f32 to vector<8x128xf32>
    %105 = arith.mulf %104, %103 : vector<8x128xf32>
    %cst_40 = arith.constant 4.471500e-02 : f32
    %106 = vector.broadcast %cst_40 : f32 to vector<8x128xf32>
    %107 = arith.mulf %106, %103 : vector<8x128xf32>
    %108 = arith.mulf %107, %103 : vector<8x128xf32>
    %109 = arith.mulf %108, %103 : vector<8x128xf32>
    %110 = arith.addf %103, %109 : vector<8x128xf32>
    %cst_41 = arith.constant 0.797884583 : f32
    %111 = vector.broadcast %cst_41 : f32 to vector<8x128xf32>
    %112 = arith.mulf %111, %110 : vector<8x128xf32>
    %113 = math.tanh %112 : vector<8x128xf32>
    %cst_42 = arith.constant 1.000000e+00 : f32
    %114 = vector.broadcast %cst_42 : f32 to vector<8x128xf32>
    %115 = arith.addf %114, %113 : vector<8x128xf32>
    %116 = arith.mulf %105, %115 : vector<8x128xf32>
    %117 = arith.truncf %116 : vector<8x128xf32> to vector<8x128xbf16>
    %c0_43 = arith.constant 0 : index
    %c0_44 = arith.constant 0 : index
    %118 = vector.load %arg15[%c0_43, %c0_44] : memref<128x32xbf16, #tpu.memory_space<vmem>>, vector<128x32xbf16>
    %cst_45 = arith.constant dense<0.000000e+00> : vector<8x32xf32>
    %119 = tpu.matmul %117, %118, %cst_45 {dimension_numbers = #tpu.dot_dimension_numbers<[1], [0], [0], [1], [0, 0, 1, 1], [], []>} : vector<8x128xbf16>, vector<128x32xbf16>, vector<8x32xf32> -> vector<8x32xf32>
    %c0_46 = arith.constant 0 : index
    %c0_47 = arith.constant 0 : index
    %120 = vector.load %arg16[%c0_46, %c0_47] : memref<1x32xf32, #tpu.memory_space<vmem>>, vector<1x32xf32>
    %121 = vector.shape_cast %120 : vector<1x32xf32> to vector<32xf32>
    %122 = vector.shape_cast %121 : vector<32xf32> to vector<1x32xf32>
    %123 = vector.broadcast %122 : vector<1x32xf32> to vector<8x32xf32>
    %124 = arith.addf %119, %123 : vector<8x32xf32>
    %125 = arith.addf %67, %124 : vector<8x32xf32>
    %c0_48 = arith.constant 0 : index
    %c0_49 = arith.constant 0 : index
    %c0_50 = arith.constant 0 : index
    %126 = vector.load %arg17[%c0_48, %c0_49, %c0_50] : memref<1x8x32xf32, #tpu.memory_space<vmem>>, vector<1x8x32xf32>
    %127 = vector.shape_cast %126 : vector<1x8x32xf32> to vector<8x32xf32>
    %128 = vector.shape_cast %125 : vector<8x32xf32> to vector<1x8x32xf32>
    tpu.vector_store %arg17[%c0_48, %c0_49, %c0_50], %128 {strides = array<i32>} : memref<1x8x32xf32, #tpu.memory_space<vmem>>, vector<1x8x32xf32>,
    return
  }
  func.func @transform_0(%arg0: i32, %arg1: i32) -> (i32, i32, i32) {
    %c0_i32 = arith.constant 0 : i32
    %c0_i32_0 = arith.constant 0 : i32
    %c0_i32_1 = arith.constant 0 : i32
    return %arg0, %c0_i32, %c0_i32_0 : i32, i32, i32
  }
  func.func @transform_1(%arg0: i32, %arg1: i32) -> (i32, i32) {
    %c0_i32 = arith.constant 0 : i32
    %c0_i32_0 = arith.constant 0 : i32
    %c0_i32_1 = arith.constant 0 : i32
    return %c0_i32, %c0_i32_0 : i32, i32
  }
  func.func @transform_2(%arg0: i32, %arg1: i32) -> (i32, i32) {
    %c0_i32 = arith.constant 0 : i32
    %c0_i32_0 = arith.constant 0 : i32
    %c0_i32_1 = arith.constant 0 : i32
    return %c0_i32, %c0_i32_0 : i32, i32
  }
  func.func @transform_3(%arg0: i32, %arg1: i32) -> (i32, i32) {
    %c0_i32 = arith.constant 0 : i32
    %c0_i32_0 = arith.constant 0 : i32
    %c0_i32_1 = arith.constant 0 : i32
    return %c0_i32, %c0_i32_0 : i32, i32
  }
  func.func @transform_4(%arg0: i32, %arg1: i32) -> (i32, i32) {
    %c0_i32 = arith.constant 0 : i32
    %c0_i32_0 = arith.constant 0 : i32
    %c0_i32_1 = arith.constant 0 : i32
    return %c0_i32, %c0_i32_0 : i32, i32
  }
  func.func @transform_5(%arg0: i32, %arg1: i32) -> (i32, i32) {
    %c0_i32 = arith.constant 0 : i32
    %c0_i32_0 = arith.constant 0 : i32
    %c0_i32_1 = arith.constant 0 : i32
    return %c0_i32, %c0_i32_0 : i32, i32
  }
  func.func @transform_6(%arg0: i32, %arg1: i32) -> (i32, i32) {
    %c0_i32 = arith.constant 0 : i32
    %c0_i32_0 = arith.constant 0 : i32
    %c0_i32_1 = arith.constant 0 : i32
    return %c0_i32, %c0_i32_0 : i32, i32
  }
  func.func @transform_7(%arg0: i32, %arg1: i32) -> (i32, i32) {
    %c0_i32 = arith.constant 0 : i32
    %c0_i32_0 = arith.constant 0 : i32
    %c0_i32_1 = arith.constant 0 : i32
    return %c0_i32, %c0_i32_0 : i32, i32
  }
  func.func @transform_8(%arg0: i32, %arg1: i32) -> (i32, i32) {
    %c0_i32 = arith.constant 0 : i32
    %c0_i32_0 = arith.constant 0 : i32
    %c0_i32_1 = arith.constant 0 : i32
    return %c0_i32, %c0_i32_0 : i32, i32
  }
  func.func @transform_9(%arg0: i32, %arg1: i32) -> (i32, i32) {
    %c0_i32 = arith.constant 0 : i32
    %c0_i32_0 = arith.constant 0 : i32
    %c0_i32_1 = arith.constant 0 : i32
    return %c0_i32, %c0_i32_0 : i32, i32
  }
  func.func @transform_10(%arg0: i32, %arg1: i32) -> (i32, i32) {
    %c0_i32 = arith.constant 0 : i32
    %c0_i32_0 = arith.constant 0 : i32
    %c0_i32_1 = arith.constant 0 : i32
    return %c0_i32, %c0_i32_0 : i32, i32
  }
  func.func @transform_11(%arg0: i32, %arg1: i32) -> (i32, i32) {
    %c0_i32 = arith.constant 0 : i32
    %c0_i32_0 = arith.constant 0 : i32
    %c0_i32_1 = arith.constant 0 : i32
    return %c0_i32, %c0_i32_0 : i32, i32
  }
  func.func @transform_12(%arg0: i32, %arg1: i32) -> (i32, i32) {
    %c0_i32 = arith.constant 0 : i32
    %c0_i32_0 = arith.constant 0 : i32
    %c0_i32_1 = arith.constant 0 : i32
    return %c0_i32, %c0_i32_0 : i32, i32
  }
  func.func @transform_13(%arg0: i32, %arg1: i32) -> (i32, i32) {
    %c0_i32 = arith.constant 0 : i32
    %c0_i32_0 = arith.constant 0 : i32
    %c0_i32_1 = arith.constant 0 : i32
    return %c0_i32, %c0_i32_0 : i32, i32
  }
  func.func @transform_14(%arg0: i32, %arg1: i32) -> (i32, i32) {
    %c0_i32 = arith.constant 0 : i32
    %c0_i32_0 = arith.constant 0 : i32
    %c0_i32_1 = arith.constant 0 : i32
    return %c0_i32, %c0_i32_0 : i32, i32
  }
  func.func @transform_15(%arg0: i32, %arg1: i32) -> (i32, i32, i32) {
    %c0_i32 = arith.constant 0 : i32
    %c0_i32_0 = arith.constant 0 : i32
    return %arg0, %arg1, %c0_i32 : i32, i32, i32
  }
}

</mosaic_0001>

<bundles_post_ra>
// kernel: tpu_custom_call.1
= control target key start
LH: loop header
LB: loop body
LE: loop exit
PB: predicated region body
PF: predicated region fallthrough
CT: control target
= control target key end

     0   :  { %s4393_s0 = inlined_call_operand.vmem [shape: f32[2,16,32], index: 0, kind: input, shape index: {}]   ;;  %s4394_s1 = inlined_call_operand.vmem [shape: f32[1,32], index: 1, kind: input, shape index: {}]   ;;  %s4395_s2 = inlined_call_operand.vmem [shape: f32[1,32], index: 2, kind: input, shape index: {}]   ;;  %s4396_s3 = inlined_call_operand.vmem [shape: bf16[32,32], index: 3, kind: input, shape index: {}]   ;;  %s4397_s4 = inlined_call_operand.vmem [shape: f32[1,32], index: 4, kind: input, shape index: {}]   ;;  %s4398_s5 = inlined_call_operand.vmem [shape: bf16[32,64], index: 5, kind: input, shape index: {}]   ;;  %s4399_s6 = inlined_call_operand.vmem [shape: f32[1,64], index: 6, kind: input, shape index: {}]   ;;  %s4400_s7 = inlined_call_operand.vmem [shape: bf16[32,32], index: 7, kind: input, shape index: {}]   ;;  %s4401_s8 = inlined_call_operand.vmem [shape: f32[1,32], index: 8, kind: input, shape index: {}]   ;;  %s4402_s9 = inlined_call_operand.vmem [shape: f32[1,32], index: 9, kind: input, shape index: {}]   ;;  %s4403_s10 = inlined_call_operand.vmem [shape: f32[1,32], index: 10, kind: input, shape index: {}]   ;;  %s4404_s11 = inlined_call_operand.hbm [shape: bf16[32,128], index: 11, kind: input, shape index: {}]   ;;  %s4405_s12 = inlined_call_operand.hbm [shape: f32[1,128], index: 12, kind: input, shape index: {}]   ;;  %s4406_s13 = inlined_call_operand.vmem [shape: bf16[128,32], index: 13, kind: input, shape index: {}]   ;;  %s4407_s14 = inlined_call_operand.vmem [shape: f32[1,32], index: 14, kind: input, shape index: {}]   ;;  %s4408_s15 = inlined_call_operand.hbm [shape: f32[2,16,32], index: 15, kind: output, shape index: {}]  }
   0x1   :  { %4419 = sst [smem:[#allocation21_spill]] %s4393_s0 }
   0x2   :  { %4420 = sst [smem:[#allocation22_spill]] %s4406_s13 }
   0x3   :  { %4421 = sst [smem:[#allocation23_spill]] %s4407_s14 }
   0x4   :  { %4422 = sst [smem:[#allocation24_spill]] %s4408_s15 }
   0x5   :  { %20 = vsyncpa [#allocation5], 0 }
   0x6   :  { %21 = vsyncpa [#allocation8], 0 }
   0x7   :  { %22 = vsyncpa [#allocation6], 0 }
   0x8   :  { %24 = vsyncpa [#allocation6 + $0x1], 0  ;;  %s3675_s18 = smov 0   ;;  %s3677_s19 = smov 0  }
   0x9   :  { %s3679_s20 = smov 0   ;;  %s3681_s21 = smov 0  }
   0xa   :  { %s3683_s22 = smov 0   ;;  %s3685_s23 = smov 0  }
   0xb   :  { %s3687_s24 = smov 0   ;;  %s3689_s25 = smov 0  }
   0xc LB: > { %4423 = sst [smem:[#allocation13_spill]] %s3455_s18  ;;  %s2674_s26 = sadd.s32 4294967295, %s3483_s25   ;;  %s3483_s25 = sphi %s3689_s25, %s30_s25   ;;  %s3479_s24 = sphi %s3687_s24, %s4468_s24   ;;  %s3475_s23 = sphi %s3685_s23, %s4467_s23   ;;  %s3471_s22 = sphi %s3683_s22, %s4466_s22   ;;  %s3467_s21 = sphi %s3681_s21, %s4465_s21   ;;  %s3463_s20 = sphi %s3679_s20, %s4464_s20   ;;  %s3459_s19 = sphi %s3677_s19, %s4470_s19   ;;  %s3455_s18 = sphi %s3675_s18, %s4469_s18  }
   0xd   : > { %4424 = sst [smem:[#allocation14_spill]] %s3463_s20  ;;  %s2675_s27 = sadd.s32 4294967294, %s3483_s25  }
   0xe   : > { %4425 = sst [smem:[#allocation15_spill]] %s3475_s23  ;;  %s39_s28 = sadd.s32 1, %s3475_s23 }
   0xf   : > { %4426 = sst [smem:[#allocation16_spill]] %s3479_s24  ;;  %s42_s29 = sadd.s32 1, %s3479_s24 }
  0x10   : > { %p40_p0 = scmp.ge.s32.totalorder %s39_s28, 2  ;;  %s371_s30 = sadd.s32 1, %s3463_s20 }
  0x11   : > { %p381_p1 = scmp.ne.s32.totalorder %s3463_s20, %s3459_s19  ;;  %p382_p2 = scmp.eq.s32.totalorder %s2674_s26, 3 }
  0x12   : > { %s4472_s28 = smov (%p40_p0, %s39_s28), 0  ;;  %s4474_s29 = smov (!%p40_p0, %s42_s29), %s3479_s24 }
  0x13   : > { %4427 = sst [smem:[#allocation17_spill]] %s4472_s28  ;;  %s367_s16 = ssub.s32 %s3475_s23, %s4472_s28 }
  0x14   : > { %p3727_p3 = por %p382_p2, %p381_p1  ;;  %p44_p4 = scmp.ge.s32.totalorder %s4474_s29, 2 }
  0x15   : > { %p387_p5 = scmp.ne.s32.totalorder %s3459_s19, %s3455_s18  ;;  %p388_p6 = scmp.eq.s32.totalorder %s2675_s27, 3 }
  0x16   : > { %p2676_p7 = scmp.ge.s32.totalorder %s3483_s25, 1  ;;  %s4476_s29 = smov (%p44_p4, %s4474_s29), 0 }
  0x17   : > { %4429 = sst [smem:[#allocation18_spill]] %s4476_s29  ;;  %p3736_p8 = por %p388_p6, %p387_p5 }
  0x18   : > { %p395_p9 = scmp.lt.s32.totalorder %s3483_s25, 5  ;;  %s366_s14 = ssub.s32 %s3479_s24, %s4476_s29 }
  0x19   : > { %s4430_s15 = scalar_select %p3736_p8, 1, 0 }
  0x1a   : > { %s368_s13 = sor.u32 %s367_s16, %s366_s14  ;;  %p3743_p10 = pnand %p2676_p7, %p395_p9 }
  0x1b   : > { %4431 = sst [smem:[#allocation19_spill]] %s4430_s15  ;;  %p369_p11 = scmp.eq.s32.totalorder %s368_s13, 0 }
  0x1c   : > { %p3747_p12 = scmp.eq.s32.totalorder %s2674_s26, 0  ;;  %p2924_p13 = pneg %p3743_p10 }
  0x1d   : > { %s3754_s27 = scalar_select %p369_p11, %s3463_s20, %s371_s30  }
  0x1e   : > { %s3569_s18 = smov [#allocation4]   ;;  %p3758_p0 = pnand %p3747_p12, %p2924_p13 }
  0x1f   : > { %4434 = sst [smem:[#allocation20_spill]] %s3754_s27  ;;  %s437_s15 = sshll.u32 %s3569_s18, 4  ;;  %s438_s15 = int_to_ptr.vmem [resolvable:$true] %s437_s15 }
  0x20   : > { %p3249_p1 = pneg %p3758_p0  ;;  %s3258_s13 = scalar_lea.vmem %s438_s15, 256 }
  0x21   : > { %p3259_p2 = scmp.ne.s32.totalorder %s438_s15, %s3258_s13  ;;  %p3266_p6 = scmp.lt.s32.totalorder %s438_s15, %s438_s15 }
  0x22   : > { %p3267_p7 = scmp.lt.s32.totalorder %s3258_s13, %s3258_s13 }
  0x23   : > { %p3261_p4 = pnand %p3259_p2, %p3249_p1 }
  0x24   : > { %p3268_p9 = por %p3267_p7, %p3266_p6 }
  0x25   : > { %p3262_p5 = pneg %p3261_p4 }
  0x27   : > { %p3269_p11 = pnand %p3268_p9, %p3262_p5 }
  0x29   : > { %3272 = shalt.err (!%p3269_p11)
}
  0x2a   : > { %s3570_s18 = smov 64   ;;  %s3571_s26 = smov 4  }
  0x2b   : > { %2927 = dma.hbm_to_vmem [thread:$0]  (!%p3758_p0), %s4404_s11, 256, %s438_s15, [#allocation5], %s3570_s18, %s3570_s18, %s3571_s26  }
  0x2c   : > { %s3572_s29 = smov [#allocation7]  }
  0x2d   : > { %s451_s24 = sshll.u32 %s3572_s29, 4  ;;  %s452_s24 = int_to_ptr.vmem [resolvable:$true] %s451_s24 }
  0x2e   : > { %s3284_s27 = scalar_lea.vmem %s452_s24, 16  ;;  %s3291_s13 = scalar_lea.vmem %s452_s24, 32 }
  0x2f   : > { %p3285_p13 = scmp.ne.s32.totalorder %s452_s24, %s3284_s27  ;;  %p3292_p5 = scmp.lt.s32.totalorder %s452_s24, %s452_s24 }
  0x30   : > { %p3293_p6 = scmp.lt.s32.totalorder %s3291_s13, %s3284_s27 }
  0x31   : > { %p3287_p2 = pnand %p3285_p13, %p3249_p1 }
  0x32   : > { %p3294_p7 = por %p3293_p6, %p3292_p5 }
  0x33   : > { %p3288_p4 = pneg %p3287_p2 }
  0x35   : > { %p3295_p9 = pnand %p3294_p7, %p3288_p4 }
  0x37   : > { %3298 = shalt.err (!%p3295_p9)
}
  0x38   : > { %2930 = dma.hbm_to_vmem [thread:$0]  (!%p3758_p0), %s4405_s12, 16, %s452_s24, [#allocation8]  }
  0x39   : > { %478 = sbr.rel (%p3743_p10) target bundleno = 3185 (0xc71), region = 80 }
  0x3e   : > { %3442 = dma.done.wait (%p3747_p12), [#allocation5], 256  }
  0x3f   : > { %3444 = vsyncadd (%p3747_p12), [#allocation5], 4294967040 }
  0x40   : > { %3446 = dma.done.wait (%p3747_p12), [#allocation8], 16  }
  0x41   : > { %3448 = vsyncadd (%p3747_p12), [#allocation8], 4294967280  ;;  %s4418_s15 = sand.u32 1, %s3459_s19   ;;  %p530_p0 = scmp.lt.s32.totalorder %s3471_s22, 1  ;;  %v3806_v0 = vld [vmem:[%s4394_s1] sm:$0x1] }
  0x42   : > { %s3794_s20 = sshll.u32 %s4418_s15, 3  ;;  %s2686_s24 = sshll.u32 %s3467_s21, 3  ;;  %v3811_v1 = vld [vmem:[%s4395_s2] sm:$0x1] }
  0x43   : > { %s531_s28 = scalar_select %p530_p0, %s3471_s22, 1 }
  0x44   : > { %s4436_s0 = sld [smem:[#allocation21_spill]]  ;;  %s529_s30 = scalar_lea.vmem [#allocation9], %s3794_s20 }
  0x45   : > { %s2760_s29 = sshll.u32 %s531_s28, 4  ;;  %p2687_p10 = scmp.ne.s32.totalorder %s3467_s21, 0 }
  0x46   : > { %s3575_s16 = smov (!%p2687_p10), 112   ;;  %s3576_s13 = smov (!%p2687_p10), 120  }
  0x47   : > { %542 = sbr.rel (%p2687_p10) target bundleno = 851 (0x353), region = 92  ;;  %s3577_s28 = smov (!%p2687_p10), 104  }
  0x4a   : > { %s3801_s18 = scalar_lea.vmem %s4436_s0, %s2760_s29  ;;  %s3578_s29 = smov (!%p2687_p10), 96  }
  0x4c   : > { %v543_v2 = vld [vmem:[%s3801_s18] sm:$0xff]  ;;  %vm545_vm0 = vcmask 261120   ;;  %v544_v3 = vld [vmem:[%s3801_s18 + $0x8] sm:$0xff]  ;;  %v3573_v17 = vmov 0.0   ;;  %vm3574_vm1 = vmmov 0   ;;  %v574_v25 = vlaneseq }
  0x4d   : > { %v546_v4 = vsel %vm545_vm0, %v543_v2, 0.0  ;;  %v549_v5 = vsel %vm545_vm0, %v544_v3, 0.0  ;;  %v3197_v16 = vld [vmem:[%s4398_s5 + $0x8] sm:$0xff]   ;;  %2814 = vmatprep.subr.bf16.mxu0 %v3573_v17  ;;  %2818 = vmatprep.mubr.msk.bf16.mxu0 %vm3574_vm1, %v3573_v17  ;;  %v3198_v18 = vld [vmem:[%s4398_s5] sm:$0xff]   ;;  %v3579_v46 = vmov 1983009808  }
  0x4e   : > { %547 = vadd.xlane.f32.xlu0 %v546_v4  ;;  %2815 = vmatpush3.bf16.msra.mxu0 %v3197_v16  ;;  %v575_v26 = vshrl.u32 %v574_v25, 7  ;;  %v2688_v39 = vld [vmem:[%s4399_s6] ss:$0 sm:$0xff]  ;;  %v680_v47 = vunpack.c.l.s4 %v3579_v46  ;;  %v3580_v48 = vmov 1934713408   ;;  %vm1141_vm2 = vcmask 60416  }
  0x4f   : > { %2816 = vmatprep.subr.bf16.mxu0 %v3573_v17  ;;  %v712_v49 = vunpack.c.l.s4 %v3580_v48 }
  0x50   : > { %v576_v27 = vsub.s32 0, %v575_v26  ;;  %v681_v50 = vunpack.c.0.s8 %v680_v47 }
  0x51   : > { %v713_v53 = vunpack.c.0.s8 %v712_v49 }
  0x52   : > { %550 = vadd.xlane.f32.xlu0 %v549_v5  ;;  %2817 = vmatpush3.bf16.msra.mxu0 %v3198_v18  ;;  %v577_v30 = vrot.slane %v3806_v0, %v576_v27  ;;  %v585_v34 = vrot.slane %v3811_v1, %v576_v27  ;;  %v3836_v54 = vsub.s32 %v681_v50, %v575_v26 }
  0x53   : > { %v3840_v61 = vsub.s32 %v713_v53, %v575_v26 }
  0xd7   : > { %v548_v6 = vpop.xlane.xlu0 %547 }
  0xd8   : > { %v553_v7 = vmul.f32 0.03125, %v548_v6 }
  0xda   : > { %v555_v8 = vsub.f32 %v543_v2, %v553_v7 }
  0xdb   : > { %v551_v9 = vpop.xlane.xlu0 %550 }
  0xdc   : > { %v554_v10 = vmul.f32 0.03125, %v551_v9  ;;  %v557_v11 = vmul.f32 %v555_v8, %v555_v8 }
  0xde   : > { %v556_v12 = vsub.f32 %v544_v3, %v554_v10  ;;  %v559_v13 = vsel %vm545_vm0, %v557_v11, 0.0 }
  0xdf   : > { %560 = vadd.xlane.f32.xlu1 %v559_v13 }
  0xe0   : > { %v558_v14 = vmul.f32 %v556_v12, %v556_v12 }
  0xe2   : > { %v562_v15 = vsel %vm545_vm0, %v558_v14, 0.0 }
  0xe3   : > { %563 = vadd.xlane.f32.xlu1 %v562_v15 }
 0x168   : > { %v561_v19 = vpop.xlane.xlu1 %560 }
 0x169   : > { %v565_v20 = vmul.f32 0.03125, %v561_v19 }
 0x16b   : > { %v567_v21 = vadd.f32 1e-05, %v565_v20 }
 0x16c   : > { %v564_v22 = vpop.xlane.xlu1 %563 }
 0x16d   : > { %3199 = vrsqrt.f32 %v567_v21  ;;  %v566_v23 = vmul.f32 0.03125, %v564_v22 }
 0x16f   : > { %v568_v24 = vadd.f32 1e-05, %v566_v23 }
 0x171   : > { %3201 = vrsqrt.f32 %v568_v24 }
 0x17a   : > { %v3200_v28 = vpop.eup %3199 }
 0x17b   : > { %v571_v29 = vmul.f32 %v3200_v28, %v555_v8 }
 0x17d   : > { %v579_v33 = vmul.f32 %v577_v30, %v571_v29 }
 0x17e   : > { %v3202_v31 = vpop.eup %3201 }
 0x17f   : > { %v572_v32 = vmul.f32 %v3202_v31, %v556_v12  ;;  %v587_v36 = vadd.f32 %v585_v34, %v579_v33 }
 0x181   : > { %v580_v35 = vmul.f32 %v577_v30, %v572_v32 }
 0x183   : > { %v588_v37 = vadd.f32 %v585_v34, %v580_v35 }
 0x185   : > { %v589_v38 = vpack.c.bf16 %v588_v37, %v587_v36 }
 0x187   : > { %2819 = vmatmul.mubr.msk.bf16.vlgmr.msra.gmra.mxu0 %vm545_vm0, %v589_v38 }
 0x247   : > { %v650_v40 = vpop.f32.mrf.mxu0 }
 0x248   : > { %v651_v41 = vadd.f32 %v2688_v39, %v650_v40 }
 0x249   : > { %v2820_v42 = vpop.f32.mrf.mxu0 }
 0x24a   : > { %665 = vrot.lane.b32.xlu1 %v651_v41, %s3575_s16  ;;  %659 = vrot.lane.b32.xlu0 %v651_v41, %s3576_s13 }
 0x24b   : > { %v653_v43 = vpop.f32.mrf.mxu0 }
 0x24c   : > { %v654_v44 = vadd.f32 %v2688_v39, %v653_v43 }
 0x24d   : > { %v2821_v45 = vpop.f32.mrf.mxu0 }
 0x24e   : > { %671 = vrot.lane.b32.xlu0 %v651_v41, %s3577_s28  ;;  %661 = vrot.lane.b32.xlu1 %v654_v44, %s3576_s13 }
 0x252   : > { %813 = vrot.lane.b32.xlu0 %v651_v41, %s3578_s29  ;;  %667 = vrot.lane.b32.xlu1 %v654_v44, %s3575_s16 }
 0x256   : > { %673 = vrot.lane.b32.xlu1 %v654_v44, %s3577_s28 }
 0x25a   : > { %815 = vrot.lane.b32.xlu1 %v654_v44, %s3578_s29 }
 0x2bc   : > { %v666_v51 = vpop.permute.xlu1 %665  ;;  %v660_v52 = vpop.permute.xlu0 %659 }
 0x2bd   : > { %817 = vrot.lane.b32.xlu0 %v660_v52, %s3578_s29  ;;  %v677_v55 = vcombine.low %v651_v41, %v666_v51  ;;  %v678_v56 = vcombine.high %v651_v41, %v666_v51 }
 0x2bf   : > { %v685_v62 = vrot.slane %v677_v55, %v3836_v54  ;;  %v692_v63 = vrot.slane %v678_v56, %v3836_v54 }
 0x2c0   : > { %v672_v57 = vpop.permute.xlu0 %671  ;;  %v662_v58 = vpop.permute.xlu1 %661 }
 0x2c1   : > { %v693_v59 = vcombine.low %v660_v52, %v672_v57  ;;  %v694_v60 = vcombine.high %v660_v52, %v672_v57  ;;  %821 = vrot.lane.b32.xlu0 %v666_v51, %s3578_s29  ;;  %819 = vrot.lane.b32.xlu1 %v662_v58, %s3578_s29 }
 0x2c3   : > { %v701_v2 = vrot.slane %v693_v59, %v3836_v54  ;;  %v708_v3 = vrot.slane %v694_v60, %v3836_v54 }
 0x2c4   : > { %v668_v4 = vpop.permute.xlu1 %667 }
 0x2c5   : > { %v709_v5 = vcombine.low %v685_v62, %v701_v2  ;;  %v710_v6 = vcombine.high %v685_v62, %v701_v2  ;;  %v725_v7 = vcombine.low %v692_v63, %v708_v3  ;;  %v726_v8 = vcombine.high %v692_v63, %v708_v3  ;;  %825 = vrot.lane.b32.xlu0 %v672_v57, %s3578_s29 }
 0x2c6   : > { %823 = vrot.lane.b32.xlu1 %v668_v4, %s3578_s29  ;;  %v745_v13 = vcombine.low %v654_v44, %v668_v4  ;;  %v746_v14 = vcombine.high %v654_v44, %v668_v4 }
 0x2c7   : > { %v717_v9 = vrot.slane %v709_v5, %v3840_v61  ;;  %v724_v10 = vrot.slane %v710_v6, %v3840_v61  ;;  %v733_v11 = vrot.slane %v725_v7, %v3840_v61  ;;  %v740_v12 = vrot.slane %v726_v8, %v3840_v61 }
 0x2c8   : > { %v674_v15 = vpop.permute.xlu1 %673  ;;  %v753_v26 = vrot.slane %v745_v13, %v3836_v54  ;;  %v760_v27 = vrot.slane %v746_v14, %v3836_v54 }
 0x2c9   : > { %v973_v16 = vcombine.low %v717_v9, %v724_v10  ;;  %v2692_v17 = vcombine.high %v717_v9, %v724_v10  ;;  %v989_v18 = vcombine.low %v733_v11, %v740_v12  ;;  %v2693_v19 = vcombine.high %v733_v11, %v740_v12 }
 0x2ca   : > { %v761_v20 = vcombine.low %v662_v58, %v674_v15  ;;  %v762_v21 = vcombine.high %v662_v58, %v674_v15  ;;  %827 = vrot.lane.b32.xlu1 %v674_v15, %s3578_s29 }
 0x2cb   : > { %v980_v22 = vrot.slane %v973_v16, %v3836_v54  ;;  %v988_v23 = vrot.slane %v2692_v17, %v3836_v54  ;;  %v996_v24 = vrot.slane %v989_v18, %v3836_v54  ;;  %v1004_v25 = vrot.slane %v2693_v19, %v3836_v54  ;;  %v814_v18 = vpop.permute.xlu0 %813 }
 0x2cc   : > { %v769_v28 = vrot.slane %v761_v20, %v3836_v54  ;;  %v776_v29 = vrot.slane %v762_v21, %v3836_v54  ;;  %v816_v19 = vpop.permute.xlu1 %815 }
 0x2cd   : > { %v1005_v30 = vcombine.low %v980_v22, %v988_v23  ;;  %v1006_v31 = vcombine.high %v980_v22, %v988_v23  ;;  %v1021_v32 = vcombine.low %v996_v24, %v1004_v25  ;;  %v1022_v33 = vcombine.high %v996_v24, %v1004_v25 }
 0x2ce   : > { %v777_v34 = vcombine.low %v753_v26, %v769_v28  ;;  %v778_v35 = vcombine.high %v753_v26, %v769_v28  ;;  %v793_v36 = vcombine.low %v760_v27, %v776_v29  ;;  %v794_v37 = vcombine.high %v760_v27, %v776_v29 }
 0x2cf   : > { %v1013_v38 = vrot.slane %v1005_v30, %v3840_v61  ;;  %v1020_v39 = vrot.slane %v1006_v31, %v3840_v61  ;;  %v1029_v40 = vrot.slane %v1021_v32, %v3840_v61  ;;  %v1036_v41 = vrot.slane %v1022_v33, %v3840_v61 }
 0x2d0   : > { %v785_v42 = vrot.slane %v777_v34, %v3840_v61  ;;  %v792_v43 = vrot.slane %v778_v35, %v3840_v61  ;;  %v801_v44 = vrot.slane %v793_v36, %v3840_v61  ;;  %v808_v45 = vrot.slane %v794_v37, %v3840_v61 }
 0x2d1   : > { %v1037_v46 = vcombine.low %v1013_v38, %v1029_v40  ;;  %v1038_v47 = vcombine.high %v1013_v38, %v1029_v40  ;;  %v1039_v48 = vcombine.low %v1020_v39, %v1036_v41  ;;  %v1040_v49 = vcombine.high %v1020_v39, %v1036_v41 }
 0x2d2   : > { %v1041_v50 = vcombine.low %v785_v42, %v792_v43  ;;  %v2694_v51 = vcombine.high %v785_v42, %v792_v43  ;;  %v1057_v52 = vcombine.low %v801_v44, %v808_v45  ;;  %v2695_v53 = vcombine.high %v801_v44, %v808_v45 }
 0x2d3   : > { %v2761_v55 = vpack.c.bf16 %v1037_v46, %v1037_v46  ;;  %v2763_v56 = vpack.c.bf16 %v1038_v47, %v1038_v47  ;;  %v2765_v57 = vpack.c.bf16 %v1039_v48, %v1039_v48  ;;  %v2767_v58 = vpack.c.bf16 %v1040_v49, %v1040_v49 }
 0x2d4   : > { %v1048_v59 = vrot.slane %v1041_v50, %v3836_v54  ;;  %v1056_v60 = vrot.slane %v2694_v51, %v3836_v54  ;;  %v1064_v62 = vrot.slane %v1057_v52, %v3836_v54  ;;  %v1072_v63 = vrot.slane %v2695_v53, %v3836_v54 }
 0x2d5   : > { %1142 = vst.msk [vmem:[#allocation2] sm:$0xf] %vm1141_vm2, %v2761_v55  ;;  %1144 = vst.msk [vmem:[#allocation2 + $0x8] sm:$0xf] %vm1141_vm2, %v2763_v56 }
 0x2d6   : > { %1146 = vst.msk [vmem:[#allocation2 + $0x10] sm:$0xf] %vm1141_vm2, %v2765_v57  ;;  %1148 = vst.msk [vmem:[#allocation2 + $0x18] sm:$0xf] %vm1141_vm2, %v2767_v58  ;;  %v1073_v2 = vcombine.low %v1048_v59, %v1056_v60  ;;  %v1074_v3 = vcombine.high %v1048_v59, %v1056_v60  ;;  %v1089_v4 = vcombine.low %v1064_v62, %v1072_v63 }
 0x2d7   : > { %v1090_v5 = vcombine.high %v1064_v62, %v1072_v63 }
 0x2d8   : > { %v1081_v6 = vrot.slane %v1073_v2, %v3840_v61  ;;  %v1088_v7 = vrot.slane %v1074_v3, %v3840_v61  ;;  %v1097_v8 = vrot.slane %v1089_v4, %v3840_v61 }
 0x2d9   : > { %v1104_v9 = vrot.slane %v1090_v5, %v3840_v61 }
 0x2da   : > { %v1105_v10 = vcombine.low %v1081_v6, %v1097_v8  ;;  %v1106_v11 = vcombine.high %v1081_v6, %v1097_v8 }
 0x2db   : > { %v1107_v12 = vcombine.low %v1088_v7, %v1104_v9  ;;  %v1108_v13 = vcombine.high %v1088_v7, %v1104_v9 }
 0x2dc   : > { %v2762_v14 = vpack.c.bf16 %v1105_v10, %v1105_v10  ;;  %v2764_v15 = vpack.c.bf16 %v1106_v11, %v1106_v11 }
 0x2dd   : > { %v2766_v16 = vpack.c.bf16 %v1107_v12, %v1107_v12  ;;  %v2768_v17 = vpack.c.bf16 %v1108_v13, %v1108_v13 }
 0x2de   : > { %1143 = vst.msk [vmem:[#allocation2 + $0x4] sm:$0xf] %vm1141_vm2, %v2762_v14  ;;  %1145 = vst.msk [vmem:[#allocation2 + $0xc] sm:$0xf] %vm1141_vm2, %v2764_v15 }
 0x2df   : > { %1147 = vst.msk [vmem:[#allocation2 + $0x14] sm:$0xf] %vm1141_vm2, %v2766_v16  ;;  %1149 = vst.msk [vmem:[#allocation2 + $0x1c] sm:$0xf] %vm1141_vm2, %v2768_v17 }
 0x32f   : > { %v818_v20 = vpop.permute.xlu0 %817 }
 0x333   : > { %v822_v21 = vpop.permute.xlu0 %821  ;;  %v820_v22 = vpop.permute.xlu1 %819 }
 0x334   : > { %v837_v23 = vcombine.low %v814_v18, %v822_v21  ;;  %v838_v24 = vcombine.high %v814_v18, %v822_v21 }
 0x336   : > { %v845_v29 = vrot.slane %v837_v23, %v3836_v54  ;;  %v852_v30 = vrot.slane %v838_v24, %v3836_v54 }
 0x337   : > { %v826_v25 = vpop.permute.xlu0 %825 }
 0x338   : > { %v853_v26 = vcombine.low %v818_v20, %v826_v25  ;;  %v854_v27 = vcombine.high %v818_v20, %v826_v25  ;;  %v824_v28 = vpop.permute.xlu1 %823 }
 0x339   : > { %v905_v33 = vcombine.low %v816_v19, %v824_v28  ;;  %v906_v34 = vcombine.high %v816_v19, %v824_v28 }
 0x33a   : > { %v861_v31 = vrot.slane %v853_v26, %v3836_v54  ;;  %v868_v32 = vrot.slane %v854_v27, %v3836_v54 }
 0x33b   : > { %v913_v46 = vrot.slane %v905_v33, %v3836_v54  ;;  %v920_v47 = vrot.slane %v906_v34, %v3836_v54 }
 0x33c   : > { %v869_v35 = vcombine.low %v845_v29, %v861_v31  ;;  %v870_v36 = vcombine.high %v845_v29, %v861_v31  ;;  %v885_v37 = vcombine.low %v852_v30, %v868_v32  ;;  %v886_v38 = vcombine.high %v852_v30, %v868_v32  ;;  %v828_v39 = vpop.permute.xlu1 %827 }
 0x33d   : > { %v921_v40 = vcombine.low %v820_v22, %v828_v39  ;;  %v922_v41 = vcombine.high %v820_v22, %v828_v39 }
 0x33e   : > { %v877_v42 = vrot.slane %v869_v35, %v3840_v61  ;;  %v884_v43 = vrot.slane %v870_v36, %v3840_v61  ;;  %v893_v44 = vrot.slane %v885_v37, %v3840_v61  ;;  %v900_v45 = vrot.slane %v886_v38, %v3840_v61 }
 0x33f   : > { %v929_v48 = vrot.slane %v921_v40, %v3836_v54  ;;  %v936_v49 = vrot.slane %v922_v41, %v3836_v54 }
 0x340   : > { %v1150_v50 = vcombine.low %v877_v42, %v884_v43  ;;  %v2704_v51 = vcombine.high %v877_v42, %v884_v43  ;;  %v1166_v52 = vcombine.low %v893_v44, %v900_v45  ;;  %v2705_v53 = vcombine.high %v893_v44, %v900_v45 }
 0x341   : > { %v937_v55 = vcombine.low %v913_v46, %v929_v48  ;;  %v938_v56 = vcombine.high %v913_v46, %v929_v48  ;;  %v953_v57 = vcombine.low %v920_v47, %v936_v49  ;;  %v954_v58 = vcombine.high %v920_v47, %v936_v49 }
 0x342   : > { %v1157_v59 = vrot.slane %v1150_v50, %v3836_v54  ;;  %v1165_v60 = vrot.slane %v2704_v51, %v3836_v54  ;;  %v1173_v62 = vrot.slane %v1166_v52, %v3836_v54  ;;  %v1181_v63 = vrot.slane %v2705_v53, %v3836_v54 }
 0x343   : > { %v945_v2 = vrot.slane %v937_v55, %v3840_v61  ;;  %v952_v3 = vrot.slane %v938_v56, %v3840_v61  ;;  %v961_v4 = vrot.slane %v953_v57, %v3840_v61  ;;  %v968_v5 = vrot.slane %v954_v58, %v3840_v61 }
 0x344   : > { %v1182_v6 = vcombine.low %v1157_v59, %v1165_v60  ;;  %v1183_v7 = vcombine.high %v1157_v59, %v1165_v60  ;;  %v1198_v8 = vcombine.low %v1173_v62, %v1181_v63  ;;  %v1199_v9 = vcombine.high %v1173_v62, %v1181_v63 }
 0x345   : > { %v1218_v10 = vcombine.low %v945_v2, %v952_v3  ;;  %v2706_v11 = vcombine.high %v945_v2, %v952_v3  ;;  %v1234_v12 = vcombine.low %v961_v4, %v968_v5  ;;  %v2707_v13 = vcombine.high %v961_v4, %v968_v5 }
 0x346   : > { %v1190_v14 = vrot.slane %v1182_v6, %v3840_v61  ;;  %v1197_v15 = vrot.slane %v1183_v7, %v3840_v61  ;;  %v1206_v16 = vrot.slane %v1198_v8, %v3840_v61  ;;  %v1213_v17 = vrot.slane %v1199_v9, %v3840_v61 }
 0x347   : > { %v1225_v18 = vrot.slane %v1218_v10, %v3836_v54  ;;  %v1233_v19 = vrot.slane %v2706_v11, %v3836_v54  ;;  %v1241_v20 = vrot.slane %v1234_v12, %v3836_v54  ;;  %v1249_v21 = vrot.slane %v2707_v13, %v3836_v54 }
 0x348   : > { %v1214_v22 = vcombine.low %v1190_v14, %v1206_v16  ;;  %v1215_v23 = vcombine.high %v1190_v14, %v1206_v16  ;;  %v1216_v24 = vcombine.low %v1197_v15, %v1213_v17  ;;  %v1217_v25 = vcombine.high %v1197_v15, %v1213_v17 }
 0x349   : > { %v1250_v26 = vcombine.low %v1225_v18, %v1233_v19  ;;  %v1251_v27 = vcombine.high %v1225_v18, %v1233_v19  ;;  %v1266_v28 = vcombine.low %v1241_v20, %v1249_v21  ;;  %v1267_v29 = vcombine.high %v1241_v20, %v1249_v21 }
 0x34a   : > { %v2769_v30 = vpack.c.bf16 %v1214_v22, %v1214_v22  ;;  %v2771_v31 = vpack.c.bf16 %v1215_v23, %v1215_v23  ;;  %v2773_v32 = vpack.c.bf16 %v1216_v24, %v1216_v24  ;;  %v2775_v33 = vpack.c.bf16 %v1217_v25, %v1217_v25 }
 0x34b   : > { %v1258_v34 = vrot.slane %v1250_v26, %v3840_v61  ;;  %v1265_v35 = vrot.slane %v1251_v27, %v3840_v61  ;;  %v1274_v36 = vrot.slane %v1266_v28, %v3840_v61  ;;  %v1281_v54 = vrot.slane %v1267_v29, %v3840_v61 }
 0x34c   : > { %1318 = vst.msk [vmem:[#allocation3] sm:$0xf] %vm1141_vm2, %v2769_v30  ;;  %1320 = vst.msk [vmem:[#allocation3 + $0x8] sm:$0xf] %vm1141_vm2, %v2771_v31 }
 0x34d   : > { %1322 = vst.msk [vmem:[#allocation3 + $0x10] sm:$0xf] %vm1141_vm2, %v2773_v32  ;;  %1324 = vst.msk [vmem:[#allocation3 + $0x18] sm:$0xf] %vm1141_vm2, %v2775_v33  ;;  %v1282_v37 = vcombine.low %v1258_v34, %v1274_v36  ;;  %v1283_v38 = vcombine.high %v1258_v34, %v1274_v36  ;;  %v1284_v39 = vcombine.low %v1265_v35, %v1281_v54 }
 0x34e   : > { %v1285_v40 = vcombine.high %v1265_v35, %v1281_v54 }
 0x34f   : > { %v2770_v41 = vpack.c.bf16 %v1282_v37, %v1282_v37  ;;  %v2772_v42 = vpack.c.bf16 %v1283_v38, %v1283_v38  ;;  %v2774_v43 = vpack.c.bf16 %v1284_v39, %v1284_v39 }
 0x350   : > { %v2776_v44 = vpack.c.bf16 %v1285_v40, %v1285_v40 }
 0x351   : > { %1319 = vst.msk [vmem:[#allocation3 + $0x4] sm:$0xf] %vm1141_vm2, %v2770_v41  ;;  %1321 = vst.msk [vmem:[#allocation3 + $0xc] sm:$0xf] %vm1141_vm2, %v2772_v42 }
 0x352   : > { %1323 = vst.msk [vmem:[#allocation3 + $0x14] sm:$0xf] %vm1141_vm2, %v2774_v43  ;;  %1325 = vst.msk [vmem:[#allocation3 + $0x1c] sm:$0xf] %vm1141_vm2, %v2776_v44 }
 0x353 PF: > { %s1326_s27 = scalar_lea.vmem %s3801_s18, %s2686_s24  ;;  %vm1328_vm3 = vcmask 261120   ;;  %v3203_v51 = vld [vmem:[%s4396_s3 + $0x8] sm:$0xff]   ;;  %v3581_v52 = vmov 0.0   ;;  %vm3582_vm4 = vmmov 0   ;;  %v3204_v53 = vld [vmem:[%s4396_s3] sm:$0xff]   ;;  %v1344_v58 = vlaneseq  ;;  %s3583_s28 = smov 104  }
 0x354   : > { %v3928_v61 = vld [vmem:[%s1326_s27] sm:$0xff]  ;;  %2822 = vmatprep.subr.bf16.mxu0 %v3581_v52  ;;  %2826 = vmatprep.mubr.msk.bf16.mxu0 %vm3582_vm4, %v3581_v52  ;;  %s3584_s29 = smov 120   ;;  %s3585_s27 = smov 112   ;;  %v3587_v13 = vmov 1934713408  }
 0x355   : > { %v1329_v45 = vsel %vm1328_vm3, %v3928_v61, 0.0  ;;  %2823 = vmatpush3.bf16.msra.mxu0 %v3203_v51  ;;  %v3945_v59 = vshrl.u32 %v1344_v58, 7  ;;  %v2716_v7 = vld [vmem:[%s4397_s4] ss:$0 sm:$0xff]  ;;  %s1574_s14 = sadd.s32 1, %s3467_s21  ;;  %v1469_v14 = vunpack.c.l.s4 %v3587_v13 }
 0x356   : > { %1330 = vadd.xlane.f32.xlu0 %v1329_v45  ;;  %2824 = vmatprep.subr.bf16.mxu0 %v3581_v52  ;;  %p2722_p12 = scmp.le.s32.totalorder %s1574_s14, 0 }
 0x357   : > { %v1346_v60 = vsub.s32 0, %v3945_v59  ;;  %v1470_v18 = vunpack.c.0.s8 %v1469_v14  ;;  %s4035_s23 = smov (!%p2722_p12), 0  }
 0x359   : > { %2825 = vmatpush3.bf16.msra.mxu0 %v3204_v53  ;;  %v1347_v62 = vrot.slane %v3806_v0, %v1346_v60  ;;  %v1354_v3 = vrot.slane %v3811_v1, %v1346_v60  ;;  %v3586_v1 = vmov 1983009808   ;;  %v3959_v25 = vsub.s32 %v1470_v18, %v3945_v59 }
 0x35a   : > { %v1437_v12 = vunpack.c.l.s4 %v3586_v1 }
 0x35c   : > { %v1438_v15 = vunpack.c.0.s8 %v1437_v12 }
 0x35e   : > { %v3956_v19 = vsub.s32 %v1438_v15, %v3945_v59 }
 0x3df   : > { %v1331_v46 = vpop.xlane.xlu0 %1330 }
 0x3e0   : > { %v1333_v47 = vmul.f32 0.03125, %v1331_v46 }
 0x3e2   : > { %v1334_v48 = vsub.f32 %v3928_v61, %v1333_v47 }
 0x3e4   : > { %v1335_v49 = vmul.f32 %v1334_v48, %v1334_v48 }
 0x3e6   : > { %v1336_v50 = vsel %vm1328_vm3, %v1335_v49, 0.0 }
 0x3e7   : > { %1337 = vadd.xlane.f32.xlu0 %v1336_v50 }
 0x470   : > { %v1338_v55 = vpop.xlane.xlu0 %1337 }
 0x471   : > { %v1339_v56 = vmul.f32 0.03125, %v1338_v55 }
 0x473   : > { %v1340_v57 = vadd.f32 1e-05, %v1339_v56 }
 0x475   : > { %3205 = vrsqrt.f32 %v1340_v57 }
 0x482   : > { %v3206_v63 = vpop.eup %3205 }
 0x483   : > { %v1342_v2 = vmul.f32 %v3206_v63, %v1334_v48 }
 0x485   : > { %v1349_v4 = vmul.f32 %v1347_v62, %v1342_v2 }
 0x487   : > { %v1356_v5 = vadd.f32 %v1354_v3, %v1349_v4  ;;  %v3995_v4 = vmov 0.0  }
 0x489   : > { %v1357_v6 = vpack.c.bf16 %v1356_v5, %v1356_v5  ;;  %v3997_v5 = vmov 0.0  }
 0x48b   : > { %2827 = vmatmul.mubr.msk.bf16.vlgmr.msra.gmra.mxu0 %vm1328_vm3, %v1357_v6  ;;  %v3999_v6 = vmov 0.0  }
 0x54b   : > { %v1418_v8 = vpop.f32.mrf.mxu0 }
 0x54c   : > { %v1419_v9 = vadd.f32 %v2716_v7, %v1418_v8  ;;  %v4001_v7 = vmov 0.0   ;;  %v4003_v8 = vmov 0.0  }
 0x54d   : > { %v2828_v10 = vpop.f32.mrf.mxu0 }
 0x54e   : > { %1431 = vrot.lane.b32.xlu0 %v1419_v9, %s3583_s28  ;;  %1425 = vrot.lane.b32.xlu1 %v1419_v9, %s3584_s29  ;;  %v4007_v10 = vmov 0.0  }
 0x54f   : > { %v1421_v0 = vpop.f32.mrf.mxu0 }
 0x550   : > { %v4009_v0 = vmov 0.0  }
 0x551   : > { %v2829_v11 = vpop.f32.mrf.mxu0 }
 0x552   : > { %1428 = vrot.lane.b32.xlu1 %v1419_v9, %s3585_s27 }
 0x5c0   : > { %v1432_v16 = vpop.permute.xlu0 %1431  ;;  %v1426_v17 = vpop.permute.xlu1 %1425 }
 0x5c1   : > { %v1450_v20 = vcombine.low %v1426_v17, %v1432_v16  ;;  %v1451_v21 = vcombine.high %v1426_v17, %v1432_v16 }
 0x5c3   : > { %v1458_v26 = vrot.slane %v1450_v20, %v3956_v19  ;;  %v1465_v27 = vrot.slane %v1451_v21, %v3956_v19 }
 0x5c4   : > { %v1429_v22 = vpop.permute.xlu1 %1428 }
 0x5c5   : > { %v1434_v23 = vcombine.low %v1419_v9, %v1429_v22  ;;  %v1435_v24 = vcombine.high %v1419_v9, %v1429_v22  ;;  %v4005_v9 = vmov 0.0  }
 0x5c7   : > { %v1442_v28 = vrot.slane %v1434_v23, %v3956_v19  ;;  %v1449_v29 = vrot.slane %v1435_v24, %v3956_v19 }
 0x5c9   : > { %v1466_v30 = vcombine.low %v1442_v28, %v1458_v26  ;;  %v1467_v31 = vcombine.high %v1442_v28, %v1458_v26  ;;  %v1482_v32 = vcombine.low %v1449_v29, %v1465_v27  ;;  %v1483_v33 = vcombine.high %v1449_v29, %v1465_v27 }
 0x5cb   : > { %v1474_v34 = vrot.slane %v1466_v30, %v3959_v25  ;;  %v1481_v35 = vrot.slane %v1467_v31, %v3959_v25  ;;  %v1490_v36 = vrot.slane %v1482_v32, %v3959_v25  ;;  %v1497_v54 = vrot.slane %v1483_v33, %v3959_v25 }
 0x5cd   : > { %v1502_v37 = vcombine.low %v1474_v34, %v1481_v35  ;;  %v2720_v38 = vcombine.high %v1474_v34, %v1481_v35  ;;  %v1518_v39 = vcombine.low %v1490_v36, %v1497_v54  ;;  %v2721_v40 = vcombine.high %v1490_v36, %v1497_v54 }
 0x5cf   : > { %v1509_v41 = vrot.slane %v1502_v37, %v3956_v19  ;;  %v1517_v42 = vrot.slane %v2720_v38, %v3956_v19  ;;  %v1525_v43 = vrot.slane %v1518_v39, %v3956_v19  ;;  %v1533_v44 = vrot.slane %v2721_v40, %v3956_v19 }
 0x5d1   : > { %v1534_v45 = vcombine.low %v1509_v41, %v1517_v42  ;;  %v1535_v46 = vcombine.high %v1509_v41, %v1517_v42  ;;  %v1550_v47 = vcombine.low %v1525_v43, %v1533_v44  ;;  %v1551_v48 = vcombine.high %v1525_v43, %v1533_v44 }
 0x5d3   : > { %v1542_v49 = vrot.slane %v1534_v45, %v3959_v25  ;;  %v1549_v50 = vrot.slane %v1535_v46, %v3959_v25  ;;  %v1558_v51 = vrot.slane %v1550_v47, %v3959_v25  ;;  %v1565_v53 = vrot.slane %v1551_v48, %v3959_v25  ;;  %2597 = sbr.rel (%p2722_p12) target bundleno = 2082 (0x822), region = 132 }
 0x5d5   : > { %v3977_v55 = vcombine.low %v1542_v49, %v1558_v51  ;;  %v3979_v56 = vcombine.high %v1542_v49, %v1558_v51  ;;  %v3981_v57 = vcombine.low %v1549_v50, %v1565_v53  ;;  %v3983_v60 = vcombine.high %v1549_v50, %v1565_v53 }
 0x5d7   : > { %v1570_v62 = vpack.c.bf16 %v3977_v55, %v3977_v55  ;;  %v1571_v63 = vpack.c.bf16 %v3979_v56, %v3979_v56  ;;  %v1572_v2 = vpack.c.bf16 %v3981_v57, %v3981_v57  ;;  %v1573_v3 = vpack.c.bf16 %v3983_v60, %v3983_v60 }
 0x5d8   : > { %v4011_v11 = vmov 0.0   ;;  %v4013_v1 = vmov 0.0   ;;  %v4015_v12 = vmov 0.0   ;;  %v4017_v13 = vmov 0.0  }
 0x5d9   : > { %v4019_v14 = vmov 0.0   ;;  %v4021_v15 = vmov 0.0   ;;  %v4023_v16 = vmov 0.0   ;;  %v4025_v17 = vmov 0.0  }
 0x5da   : > { %v4027_v18 = vmov -1e+30   ;;  %v4029_v20 = vmov -1e+30   ;;  %v4031_v21 = vmov -1e+30  }
 0x5db   : > { %v4033_v22 = vmov -1e+30  }
 0x5dc LB: >> { %v3588_v23 = vmov 0.0   ;;  %s2723_s18 = sshll.u32 %s3535_s23, 3  ;;  %vm3589_vm5 = vmmov 0   ;;  %vm1608_vm6 = vcmask 64512   ;;  %v1802_v33 = vand.u32 127, %v1344_v58  ;;  %s1578_s23 = sadd.s32 1, %s3535_s23   ;;  %s3535_s23 = sphi %s4035_s23, %s1578_s23   ;;  %v3531_v22 = vphi %v4033_v22, %v4449_v22   ;;  %v3527_v21 = vphi %v4031_v21, %v4448_v21   ;;  %v3523_v20 = vphi %v4029_v20, %v4447_v20   ;;  %v3519_v18 = vphi %v4027_v18, %v4446_v18   ;;  %v3515_v17 = vphi %v4025_v17, %v4445_v17   ;;  %v3511_v16 = vphi %v4023_v16, %v4444_v16   ;;  %v3507_v15 = vphi %v4021_v15, %v4443_v15   ;;  %v3503_v14 = vphi %v4019_v14, %v4442_v14   ;;  %v3499_v13 = vphi %v4017_v13, %v4441_v13   ;;  %v3495_v12 = vphi %v4015_v12, %v4440_v12   ;;  %v3491_v1 = vphi %v4013_v1, %v4439_v1   ;;  %v3487_v11 = vphi %v4011_v11, %v4438_v11  }
 0x5dd   : >> { %2830 = vmatprep.subr.bf16.mxu0 %v3588_v23  ;;  %2836 = vmatprep.subr.bf16.mxu1 %v3588_v23  ;;  %s4085_s26 = sshra.s32 %s2723_s18, 3  ;;  %v1803_v34 = vstv %s2723_s18  ;;  %v1799_v35 = vstv %s2686_s24  ;;  %v3590_v39 = vmov -1e+30   ;;  %vm1882_vm8 = vcmask 1043456   ;;  %p4183_p1 = scmp.ge.s32.totalorder %s1578_s23, %s1574_s14 }
 0x5de   : >> { %2832 = vmatprep.mubr.msk.bf16.mxu0 %vm3589_vm5, %v3588_v23  ;;  %2838 = vmatprep.mubr.msk.bf16.mxu1 %vm3589_vm5, %v3588_v23  ;;  %s2724_s16 = sshll.u32 %s4085_s26, 2  ;;  %v1800_v36 = vadd.s32 %v1799_v35, %v3945_v59  ;;  %v1804_v54 = vadd.s32 %v1803_v34, %v1802_v33 }
 0x5df   : >> { %s1597_s13 = scalar_lea.vmem [#allocation2], %s2724_s16  ;;  %s1603_s28 = scalar_lea.vmem [#allocation3], %s2724_s16 }
 0x5e0   : >> { %v1598_v24 = vld [vmem:[%s1597_s13] sm:$0xf]  ;;  %v1599_v26 = vld [vmem:[%s1597_s13 + $0x8] sm:$0xf]  ;;  %v1600_v29 = vld [vmem:[%s1597_s13 + $0x10] sm:$0xf]  ;;  %vm1805_vm7 = vcmp.ge.s32.totalorder %v1800_v36, %v1804_v54 }
 0x5e1   : >> { %v1613_v27 = vsel %vm1608_vm6, %v1598_v24, 0  ;;  %v1659_v28 = vsel %vm1608_vm6, %v1599_v26, 0  ;;  %v1601_v30 = vld [vmem:[%s1597_s13 + $0x18] sm:$0xf]  ;;  %v1705_v31 = vsel %vm1608_vm6, %v1600_v29, 0  ;;  %v1806_v40 = vsel %vm1805_vm7, 0.0, %v3590_v39 }
 0x5e2   : >> { %2831 = vmatpush3.bf16.xpose.msra.mxu0 %v1613_v27  ;;  %2837 = vmatpush3.bf16.xpose.msra.mxu1 %v1659_v28  ;;  %v1751_v32 = vsel %vm1608_vm6, %v1601_v30, 0  ;;  %v1605_v33 = vld [vmem:[%s1603_s28 + $0x8] sm:$0xf]  ;;  %v1606_v35 = vld [vmem:[%s1603_s28 + $0x10] sm:$0xf] }
 0x5e3   : >> { %2842 = vmatprep.subr.bf16.mxu0 %v3588_v23  ;;  %2848 = vmatprep.subr.bf16.mxu1 %v3588_v23  ;;  %v1930_v34 = vsel %vm1882_vm8, %v1605_v33, 0  ;;  %v1976_v36 = vsel %vm1882_vm8, %v1606_v35, 0  ;;  %v1607_v54 = vld [vmem:[%s1603_s28 + $0x18] sm:$0xf] }
 0x5e9   : >> { %2833 = vmatmul.mubr.msk.bf16.vlgmr.msra.gmra.mxu0 %vm1608_vm6, %v1570_v62  ;;  %2839 = vmatmul.mubr.msk.bf16.vlgmr.msra.gmra.mxu1 %vm1608_vm6, %v1571_v63 }
 0x5ea   : >> { %2843 = vmatpush3.bf16.xpose.msra.mxu0 %v1705_v31  ;;  %2849 = vmatpush3.bf16.xpose.msra.mxu1 %v1751_v32  ;;  %v1604_v31 = vld [vmem:[%s1603_s28] sm:$0xf] }
 0x5eb   : >> { %2844 = vmatprep.mubr.msk.bf16.mxu0 %vm3589_vm5, %v3588_v23  ;;  %2850 = vmatprep.mubr.msk.bf16.mxu1 %vm3589_vm5, %v3588_v23  ;;  %v1884_v32 = vsel %vm1882_vm8, %v1604_v31, 0 }
 0x5ec   : >> { %2854 = vmatprep.subr.bf16.mxu0 %v3588_v23  ;;  %2860 = vmatprep.subr.bf16.mxu1 %v3588_v23 }
 0x5f1   : >> { %2845 = vmatmul.mubr.msk.bf16.vlgmr.msra.gmra.mxu0 %vm1608_vm6, %v1572_v2  ;;  %2851 = vmatmul.mubr.msk.bf16.vlgmr.msra.gmra.mxu1 %vm1608_vm6, %v1573_v3 }
 0x5f2   : >> { %2856 = vmatprep.mubr.msk.bf16.mxu0 %vm3589_vm5, %v3588_v23  ;;  %2862 = vmatprep.mubr.msk.bf16.mxu1 %vm3589_vm5, %v3588_v23 }
 0x5f3   : >> { %2855 = vmatpush3.bf16.msra.mxu0 %v1884_v32  ;;  %2861 = vmatpush3.bf16.msra.mxu1 %v1930_v34 }
 0x5f4   : >> { %2866 = vmatprep.subr.bf16.mxu0 %v3588_v23  ;;  %2872 = vmatprep.subr.bf16.mxu1 %v3588_v23 }
 0x6a9   : >> { %v1649_v37 = vpop.f32.mrf.mxu0  ;;  %v1695_v38 = vpop.f32.mrf.mxu1 }
 0x6aa   : >> { %v1793_v41 = vmul.f32 0.35355338, %v1649_v37  ;;  %v1794_v42 = vmul.f32 0.35355338, %v1695_v38  ;;  %v2022_v37 = vsel %vm1882_vm8, %v1607_v54, 0 }
 0x6ab   : >> { %v2834_v43 = vpop.f32.mrf.mxu0  ;;  %v2840_v44 = vpop.f32.mrf.mxu1 }
 0x6ac   : >> { %v1807_v45 = vadd.f32 %v1806_v40, %v1793_v41  ;;  %v1808_v46 = vadd.f32 %v1806_v40, %v1794_v42 }
 0x6ad   : >> { %v1652_v47 = vpop.f32.mrf.mxu0  ;;  %v1698_v48 = vpop.f32.mrf.mxu1 }
 0x6ae   : >> { %v1811_v49 = vsel %vm1608_vm6, %v1807_v45, -inf  ;;  %v1814_v53 = vsel %vm1608_vm6, %v1808_v46, -inf }
 0x6af   : >> { %v2841_v50 = vpop.f32.mrf.mxu1  ;;  %1812 = vmax.xlane.f32.xlu0 %v1811_v49  ;;  %v2835_v51 = vpop.f32.mrf.mxu0 }
 0x6b1   : >> { %v1741_v4 = vpop.f32.mrf.mxu0  ;;  %v1787_v5 = vpop.f32.mrf.mxu1 }
 0x6b2   : >> { %v1795_v6 = vmul.f32 0.35355338, %v1741_v4  ;;  %v1796_v7 = vmul.f32 0.35355338, %v1787_v5 }
 0x6b3   : >> { %v2852_v8 = vpop.f32.mrf.mxu1  ;;  %1815 = vmax.xlane.f32.xlu0 %v1814_v53  ;;  %v2846_v9 = vpop.f32.mrf.mxu0 }
 0x6b4   : >> { %v1809_v10 = vadd.f32 %v1806_v40, %v1795_v6  ;;  %v1810_v0 = vadd.f32 %v1806_v40, %v1796_v7 }
 0x6b5   : >> { %v1744_v24 = vpop.f32.mrf.mxu0  ;;  %v1790_v26 = vpop.f32.mrf.mxu1 }
 0x6b6   : >> { %v1817_v27 = vsel %vm1608_vm6, %v1809_v10, -inf  ;;  %v1820_v30 = vsel %vm1608_vm6, %v1810_v0, -inf }
 0x6b7   : >> { %v2853_v28 = vpop.f32.mrf.mxu1  ;;  %1818 = vmax.xlane.f32.xlu1 %v1817_v27  ;;  %v2847_v29 = vpop.f32.mrf.mxu0 }
 0x6bb   : >> { %1821 = vmax.xlane.f32.xlu1 %v1820_v30 }
 0x738   : >> { %v1813_v38 = vpop.xlane.xlu0 %1812 }
 0x739   : >> { %v4137_v39 = vmax.f32 %v3531_v22, %v1813_v38  }
 0x73b   : >> { %v1827_v40 = vsub.f32 %v3531_v22, %v4137_v39  ;;  %v1839_v41 = vsub.f32 %v1807_v45, %v4137_v39 }
 0x73c   : >> { %v1816_v42 = vpop.xlane.xlu0 %1815 }
 0x73d   : >> { %v1843_v43 = vmul.f32 1.442695, %v1839_v41  ;;  %v4143_v44 = vmax.f32 %v3527_v21, %v1816_v42   ;;  %v1831_v30 = vmul.f32 1.442695, %v1827_v40 }
 0x73f   : >> { %v1828_v47 = vsub.f32 %v3527_v21, %v4143_v44  ;;  %v1840_v48 = vsub.f32 %v1808_v46, %v4143_v44  ;;  %3207 = vpow2.f32 %v1843_v43 }
 0x740   : >> { %v1819_v49 = vpop.xlane.xlu1 %1818 }
 0x741   : >> { %v1845_v50 = vmul.f32 1.442695, %v1840_v48  ;;  %v4149_v51 = vmax.f32 %v3523_v20, %v1819_v49   ;;  %v1833_v31 = vmul.f32 1.442695, %v1828_v47 }
 0x743   : >> { %v1829_v22 = vsub.f32 %v3523_v20, %v4149_v51  ;;  %v1841_v45 = vsub.f32 %v1809_v10, %v4149_v51  ;;  %3209 = vpow2.f32 %v1845_v50 }
 0x744   : >> { %v1822_v53 = vpop.xlane.xlu1 %1821 }
 0x745   : >> { %v1847_v4 = vmul.f32 1.442695, %v1841_v45  ;;  %v4155_v5 = vmax.f32 %v3519_v18, %v1822_v53   ;;  %v1835_v32 = vmul.f32 1.442695, %v1829_v22 }
 0x747   : >> { %v1830_v21 = vsub.f32 %v3519_v18, %v4155_v5  ;;  %v1842_v46 = vsub.f32 %v1810_v0, %v4155_v5  ;;  %3211 = vpow2.f32 %v1847_v4 }
 0x749   : >> { %v1849_v6 = vmul.f32 1.442695, %v1842_v46 }
 0x74b   : >> { %3213 = vpow2.f32 %v1849_v6 }
 0x74c   : >> { %v3208_v7 = vpop.eup %3207  ;;  %3215 = vpow2.f32 %v1831_v30 }
 0x74d   : >> { %v1855_v8 = vsel %vm1608_vm6, %v3208_v7, 0.0  ;;  %v1875_v20 = vpack.c.bf16 %v3208_v7, %v3208_v7  ;;  %3217 = vpow2.f32 %v1833_v31 }
 0x74e   : >> { %1856 = vadd.xlane.f32.xlu0 %v1855_v8  ;;  %3219 = vpow2.f32 %v1835_v32 }
 0x74f   : >> { %2857 = vmatmul.mubr.msk.bf16.vlgmr.msra.gmra.mxu0 %vm1608_vm6, %v1875_v20 }
 0x750   : >> { %v3210_v9 = vpop.eup %3209  ;;  %2867 = vmatpush3.bf16.msra.mxu0 %v1976_v36  ;;  %2868 = vmatprep.mubr.msk.bf16.mxu0 %vm3589_vm5, %v3588_v23 }
 0x751   : >> { %v1858_v10 = vsel %vm1608_vm6, %v3210_v9, 0.0  ;;  %v1876_v18 = vpack.c.bf16 %v3210_v9, %v3210_v9 }
 0x752   : >> { %1859 = vadd.xlane.f32.xlu1 %v1858_v10 }
 0x753   : >> { %2863 = vmatmul.mubr.msk.bf16.vlgmr.msra.gmra.mxu1 %vm1608_vm6, %v1876_v18 }
 0x754   : >> { %v3212_v0 = vpop.eup %3211  ;;  %2873 = vmatpush3.bf16.msra.mxu1 %v2022_v37  ;;  %2874 = vmatprep.mubr.msk.bf16.mxu1 %vm3589_vm5, %v3588_v23  ;;  %v1837_v23 = vmul.f32 1.442695, %v1830_v21 }
 0x755   : >> { %v1861_v24 = vsel %vm1608_vm6, %v3212_v0, 0.0  ;;  %v1877_v26 = vpack.c.bf16 %v3212_v0, %v3212_v0 }
 0x756   : >> { %1862 = vadd.xlane.f32.xlu0 %v1861_v24  ;;  %3221 = vpow2.f32 %v1837_v23 }
 0x757   : >> { %2869 = vmatmul.mubr.msk.bf16.vlgmr.msra.gmra.mxu0 %vm1608_vm6, %v1877_v26 }
 0x758   : >> { %v3214_v27 = vpop.eup %3213 }
 0x759   : >> { %v1864_v28 = vsel %vm1608_vm6, %v3214_v27, 0.0  ;;  %v1878_v29 = vpack.c.bf16 %v3214_v27, %v3214_v27  ;;  %v3216_v33 = vpop.eup %3215 }
 0x75a   : >> { %1865 = vadd.xlane.f32.xlu1 %v1864_v28  ;;  %v1851_v34 = vmul.f32 %v3515_v17, %v3216_v33  ;;  %v3218_v35 = vpop.eup %3217  ;;  %v1871_v22 = vmul.f32 %v3499_v13, %v3216_v33 }
 0x75b   : >> { %2875 = vmatmul.mubr.msk.bf16.vlgmr.msra.gmra.mxu1 %vm1608_vm6, %v1878_v29  ;;  %v1852_v37 = vmul.f32 %v3511_v16, %v3218_v35  ;;  %v3220_v38 = vpop.eup %3219  ;;  %v1872_v21 = vmul.f32 %v3495_v12, %v3218_v35 }
 0x75c   : >> { %v1853_v40 = vmul.f32 %v3507_v15, %v3220_v38  ;;  %v1873_v15 = vmul.f32 %v3491_v1, %v3220_v38 }
 0x763   : >> { %v3222_v43 = vpop.eup %3221 }
 0x764   : >> { %v1854_v49 = vmul.f32 %v3503_v14, %v3222_v43  ;;  %v1874_v0 = vmul.f32 %v3487_v11, %v3222_v43 }
 0x7d7   : >> { %v1857_v36 = vpop.xlane.xlu0 %1856 }
 0x7d8   : >> { %v1867_v54 = vadd.f32 %v1857_v36, %v1851_v34  }
 0x7db   : >> { %v1860_v41 = vpop.xlane.xlu1 %1859 }
 0x7dc   : >> { %v1868_v42 = vadd.f32 %v1860_v41, %v1852_v37  }
 0x7df   : >> { %v1863_v47 = vpop.xlane.xlu0 %1862 }
 0x7e0   : >> { %v1869_v48 = vadd.f32 %v1863_v47, %v1853_v40  }
 0x7e3   : >> { %v1866_v50 = vpop.xlane.xlu1 %1865 }
 0x7e4   : >> { %v1870_v45 = vadd.f32 %v1866_v50, %v1854_v49  }
 0x80f   : >> { %v1920_v17 = vpop.f32.mrf.mxu0 }
 0x810   : >> { %v2064_v53 = vadd.f32 %v1920_v17, %v1871_v22   ;;  %v4445_v17 = vmov %v1867_v54  ;;  %v4449_v22 = vmov %v4137_v39 }
 0x811   : >> { %v2858_v4 = vpop.f32.mrf.mxu0 }
 0x813   : >> { %v1923_v16 = vpop.f32.mrf.mxu0  ;;  %v1966_v46 = vpop.f32.mrf.mxu1 }
 0x814   : >> { %v2065_v6 = vadd.f32 %v1966_v46, %v1872_v21   ;;  %v4444_v16 = vmov %v1868_v42  ;;  %v4448_v21 = vmov %v4143_v44 }
 0x815   : >> { %v2859_v7 = vpop.f32.mrf.mxu0  ;;  %v2864_v8 = vpop.f32.mrf.mxu1 }
 0x816   : > { %v4452_v7 = vmov (%p4183_p1), %v2064_v53  ;;  %v4453_v8 = vmov (%p4183_p1), %v1870_v45 }
 0x817   : >> { %v1969_v20 = vpop.f32.mrf.mxu1  ;;  %v2012_v9 = vpop.f32.mrf.mxu0 }
 0x818   : >> { %v2066_v10 = vadd.f32 %v2012_v9, %v1873_v15   ;;  %v4443_v15 = vmov %v1869_v48  ;;  %v4447_v20 = vmov %v4149_v51  ;;  %v4454_v9 = vmov (%p4183_p1), %v1869_v48 }
 0x819   : >> { %v2865_v14 = vpop.f32.mrf.mxu1  ;;  %v2870_v18 = vpop.f32.mrf.mxu0 }
 0x81a   : >> { %v4439_v1 = vmov %v2066_v10  ;;  %v4442_v14 = vmov %v1870_v45  ;;  %v4446_v18 = vmov %v4155_v5  ;;  %v4451_v5 = vmov (%p4183_p1), %v2066_v10 }
 0x81b   : >> { %v2015_v13 = vpop.f32.mrf.mxu0  ;;  %v2058_v24 = vpop.f32.mrf.mxu1  ;;  %v4455_v10 = vmov (%p4183_p1), %v1868_v42 }
 0x81c   : >> { %v2067_v26 = vadd.f32 %v2058_v24, %v1874_v0   ;;  %v4441_v13 = vmov %v2064_v53  ;;  %v4456_v0 = vmov (%p4183_p1), %v1867_v54 }
 0x81d   : >> { %v2871_v27 = vpop.f32.mrf.mxu0  ;;  %v2876_v28 = vpop.f32.mrf.mxu1  ;;  %1580 = sbr.rel (!%p4183_p1) target bundleno = 1500 (0x5dc), region = 138 }
 0x81e   : >> { %v4438_v11 = vmov %v2067_v26  ;;  %v4450_v4 = vmov (%p4183_p1), %v2067_v26 }
 0x81f   : >> { %v2061_v12 = vpop.f32.mrf.mxu1 }
 0x820   : >> { %v4440_v12 = vmov %v2065_v6 }
 0x821   : >> { %v2877_v29 = vpop.f32.mrf.mxu1 }
 0x822 PF: > { %3235 = vrcp.f32 %v3567_v0  ;;  %2878 = vmatprep.subr.bf16.mxu1 %v3581_v52  ;;  %2882 = vmatprep.mubr.msk.bf16.mxu1 %vm3582_vm4, %v3581_v52  ;;  %v3224_v40 = vld [vmem:[%s4400_s7] sm:$0xff]   ;;  %s3591_s18 = smov 8   ;;  %s3592_s26 = smov 24   ;;  %vm2224_vm9 = vcmask 64512   ;;  %vm2226_vm10 = vcmask 130048   ;;  %vm2228_vm11 = vcmask 195584   ;;  %v3567_v0 = vphi %v4009_v0, %v4456_v0   ;;  %v3563_v10 = vphi %v4007_v10, %v4455_v10   ;;  %v3559_v9 = vphi %v4005_v9, %v4454_v9   ;;  %v3555_v8 = vphi %v4003_v8, %v4453_v8   ;;  %v3551_v7 = vphi %v4001_v7, %v4452_v7   ;;  %v3547_v6 = vphi %v3999_v6, %v2065_v6   ;;  %v3543_v5 = vphi %v3997_v5, %v4451_v5   ;;  %v3539_v4 = vphi %v3995_v4, %v4450_v4  }
 0x823   : > { %3237 = vrcp.f32 %v3563_v10  ;;  %2894 = vmatprep.subr.bf16.mxu0 %v3581_v52  ;;  %2910 = vmatprep.mubr.msk.bf16.mxu0 %vm3582_vm4, %v3581_v52  ;;  %s3593_s16 = smov 16   ;;  %v2736_v18 = vld [vmem:[%s4401_s8] ss:$0 sm:$0xff]  ;;  %s2756_s27 = sshll.u32 %s3471_s22, 1 }
 0x824   : > { %3239 = vrcp.f32 %v3559_v9  ;;  %s2529_s14 = sadd.s32 %s3467_s21, %s2756_s27  ;;  %s2533_s28 = sshll.u32 %s529_s30, 4  ;;  %s4338_s28 = int_to_ptr.vmem [resolvable:$true] %s2533_s28 }
 0x825   : > { %3241 = vrcp.f32 %v3555_v8  ;;  %s2757_s13 = sshll.u32 %s2529_s14, 7  ;;  %s4459_s15 = sld [smem:[#allocation24_spill]] }
 0x826   : > { %s4460_s21 = sand.u32 1, %s3459_s19   ;;  %s3299_s27 = scalar_lea.vmem %s4338_s28, 128 }
 0x827   : > { %s2518_s22 = scalar_lea.sflag [#allocation6], %s4460_s21  ;;  %p3300_p11 = scmp.ne.s32.totalorder %s4338_s28, %s3299_s27 }
 0x828   : > { %s3594_s14 = smov [#allocation9]  }
 0x829   : > { %p3301_p13 = pnand %p3300_p11, %p3727_p3  ;;  %s3303_s23 = sshll.u32 %s3594_s14, 4  ;;  %s3304_s23 = int_to_ptr.vmem [resolvable:$false] %s3303_s23 }
 0x82a   : > { %p3306_p4 = scmp.lt.s32.totalorder %s4338_s28, %s3304_s23 }
 0x82b   : > { %s4336_s0 = scalar_lea.hbm %s4459_s15, %s2757_s13  ;;  %p3302_p2 = pneg %p3301_p13 }
 0x82f   : > { %v3236_v58 = vpop.eup %3235 }
 0x830   : > { %v3238_v59 = vpop.eup %3237  ;;  %v2072_v55 = vmul.f32 %v3551_v7, %v3236_v58 }
 0x831   : > { %v3240_v56 = vpop.eup %3239  ;;  %v2073_v57 = vmul.f32 %v3547_v6, %v3238_v59 }
 0x832   : > { %v3242_v60 = vpop.eup %3241  ;;  %v2074_v62 = vmul.f32 %v3543_v5, %v3240_v56  ;;  %v3223_v5 = vld [vmem:[%s4400_s7 + $0x8] sm:$0xff]  }
 0x833   : > { %v2075_v63 = vmul.f32 %v3539_v4, %v3242_v60  ;;  %2879 = vmatpush3.bf16.msra.mxu1 %v3223_v5  ;;  %v3226_v60 = vld [vmem:[#allocation4] sm:$0xff]  }
 0x834   : > { %v2076_v2 = vcombine.low %v2072_v55, %v2074_v62  ;;  %v2077_v3 = vcombine.high %v2072_v55, %v2074_v62  ;;  %2880 = vmatprep.subr.bf16.mxu1 %v3581_v52 }
 0x835   : > { %v2092_v11 = vcombine.low %v2073_v57, %v2075_v63  ;;  %v2093_v1 = vcombine.high %v2073_v57, %v2075_v63  ;;  %v3225_v57 = vld [vmem:[#allocation4 + $0x8] sm:$0xff]  }
 0x836   : > { %v2084_v39 = vrot.slane %v2076_v2, %v3956_v19  ;;  %v2091_v44 = vrot.slane %v2077_v3, %v3956_v19  ;;  %v2740_v3 = vld [vmem:[%s4402_s9] ss:$0 sm:$0xff] }
 0x837   : > { %v2100_v51 = vrot.slane %v2092_v11, %v3956_v19  ;;  %v2107_v30 = vrot.slane %v2093_v1, %v3956_v19  ;;  %2881 = vmatpush3.bf16.msra.mxu1 %v3224_v40  ;;  %v2741_v1 = vld [vmem:[%s4403_s10] ss:$0 sm:$0xff] }
 0x838   : > { %2886 = vmatprep.subr.bf16.mxu1 %v3581_v52 }
 0x839   : > { %v2108_v31 = vcombine.low %v2084_v39, %v2100_v51  ;;  %v2109_v32 = vcombine.high %v2084_v39, %v2100_v51  ;;  %v2124_v23 = vcombine.low %v2091_v44, %v2107_v30  ;;  %v2125_v33 = vcombine.high %v2091_v44, %v2107_v30 }
 0x83b   : > { %v2116_v34 = vrot.slane %v2108_v31, %v3959_v25  ;;  %v2123_v35 = vrot.slane %v2109_v32, %v3959_v25  ;;  %v2132_v36 = vrot.slane %v2124_v23, %v3959_v25  ;;  %v2139_v54 = vrot.slane %v2125_v33, %v3959_v25 }
 0x83d   : > { %v2144_v37 = vcombine.low %v2116_v34, %v2123_v35  ;;  %v2734_v38 = vcombine.high %v2116_v34, %v2123_v35  ;;  %v2160_v41 = vcombine.low %v2132_v36, %v2139_v54  ;;  %v2735_v42 = vcombine.high %v2132_v36, %v2139_v54  ;;  %v2742_v36 = vld [vmem:[#allocation7] ss:$0 sm:$0xff] }
 0x83f   : > { %v2151_v43 = vrot.slane %v2144_v37, %v3956_v19  ;;  %v2159_v47 = vrot.slane %v2734_v38, %v3956_v19  ;;  %v2167_v48 = vrot.slane %v2160_v41, %v3956_v19  ;;  %v2175_v49 = vrot.slane %v2735_v42, %v3956_v19 }
 0x841   : > { %v2176_v50 = vcombine.low %v2151_v43, %v2159_v47  ;;  %v2192_v45 = vcombine.low %v2167_v48, %v2175_v49  ;;  %v2177_v22 = vcombine.high %v2151_v43, %v2159_v47  ;;  %v2193_v17 = vcombine.high %v2167_v48, %v2175_v49 }
 0x843   : > { %v2184_v53 = vrot.slane %v2176_v50, %v3959_v25  ;;  %v2200_v4 = vrot.slane %v2192_v45, %v3959_v25  ;;  %v2191_v21 = vrot.slane %v2177_v22, %v3959_v25  ;;  %v2207_v16 = vrot.slane %v2193_v17, %v3959_v25 }
 0x845   : > { %v2209_v46 = vcombine.high %v2184_v53, %v2200_v4  ;;  %v2208_v6 = vcombine.low %v2184_v53, %v2200_v4  ;;  %v2211_v7 = vcombine.high %v2191_v21, %v2207_v16  ;;  %v2210_v19 = vcombine.low %v2191_v21, %v2207_v16 }
 0x847   : > { %2213 = vrot.lane.b32.xlu0 %v2209_v46, %s3591_s18  ;;  %2221 = vrot.lane.b32.xlu1 %v2211_v7, %s3592_s26  ;;  %s4457_s26 = sld [smem:[#allocation22_spill]]  ;;  %s3305_s18 = scalar_lea.vmem %s3304_s23, 256 }
 0x848   : > { %p3307_p5 = scmp.lt.s32.totalorder %s3305_s18, %s3299_s27 }
 0x84a   : > { %p3308_p6 = por %p3307_p5, %p3306_p4 }
 0x84b   : > { %2217 = vrot.lane.b32.xlu0 %v2210_v19, %s3593_s16  ;;  %s4458_s16 = sld [smem:[#allocation23_spill]] }
 0x84c   : > { %p3309_p7 = pnand %p3308_p6, %p3302_p2 }
 0x84d   : > { %v3227_v30 = vld [vmem:[%s4457_s26 + $0x38] sm:$0xff]   ;;  %v3228_v31 = vld [vmem:[%s4457_s26 + $0x30] sm:$0xff]   ;;  %v3229_v32 = vld [vmem:[%s4457_s26 + $0x28] sm:$0xff]  }
 0x84e   : > { %2895 = vmatpush3.bf16.msra.mxu0 %v3227_v30  ;;  %v3230_v23 = vld [vmem:[%s4457_s26 + $0x20] sm:$0xff]   ;;  %v3231_v33 = vld [vmem:[%s4457_s26 + $0x18] sm:$0xff]   ;;  %v3232_v5 = vld [vmem:[%s4457_s26 + $0x10] sm:$0xff]  }
 0x84f   : > { %2896 = vmatprep.subr.bf16.mxu0 %v3581_v52  ;;  %v3233_v34 = vld [vmem:[%s4457_s26 + $0x8] sm:$0xff]   ;;  %v3234_v35 = vld [vmem:[%s4457_s26] sm:$0xff]  }
 0x851   : > { %v2746_v53 = vld [vmem:[%s4458_s16] ss:$0 sm:$0xff] }
 0x852   : > { %2897 = vmatpush3.bf16.msra.mxu0 %v3228_v31 }
 0x853   : > { %2898 = vmatprep.subr.bf16.mxu0 %v3581_v52 }
 0x856   : > { %2899 = vmatpush3.bf16.msra.mxu0 %v3229_v32 }
 0x857   : > { %2900 = vmatprep.subr.bf16.mxu0 %v3581_v52 }
 0x85a   : > { %2901 = vmatpush3.bf16.msra.mxu0 %v3230_v23 }
 0x85b   : > { %2902 = vmatprep.subr.bf16.mxu0 %v3581_v52 }
 0x85e   : > { %2903 = vmatpush3.bf16.msra.mxu0 %v3231_v33 }
 0x85f   : > { %2904 = vmatprep.subr.bf16.mxu0 %v3581_v52 }
 0x862   : > { %2905 = vmatpush3.bf16.msra.mxu0 %v3232_v5 }
 0x863   : > { %2906 = vmatprep.subr.bf16.mxu0 %v3581_v52 }
 0x866   : > { %2907 = vmatpush3.bf16.msra.mxu0 %v3233_v34 }
 0x867   : > { %2908 = vmatprep.subr.bf16.mxu0 %v3581_v52 }
 0x86a   : > { %2909 = vmatpush3.bf16.msra.mxu0 %v3234_v35 }
 0x8b9   : > { %v2214_v8 = vpop.permute.xlu0 %2213  ;;  %v2222_v15 = vpop.permute.xlu1 %2221 }
 0x8ba   : > { %v2225_v20 = vsel %vm2224_vm9, %v2208_v6, %v2214_v8 }
 0x8bd   : > { %v2218_v9 = vpop.permute.xlu0 %2217 }
 0x8be   : > { %v2227_v10 = vsel %vm2226_vm10, %v2225_v20, %v2218_v9 }
 0x8bf   : > { %v2229_v14 = vsel %vm2228_vm11, %v2227_v10, %v2222_v15 }
 0x8c0   : > { %v2230_v25 = vpack.c.bf16 %v2229_v14, %v2229_v14 }
 0x8c2   : > { %2883 = vmatmul.mubr.msk.bf16.vlgmr.msra.gmra.mxu1 %vm1328_vm3, %v2230_v25 }
 0x8c3   : > { %2890 = vmatprep.mubr.msk.bf16.mxu1 %vm3582_vm4, %v3581_v52  ;;  %2887 = vmatpush3.bf16.msra.mxu1 %v3225_v57 }
 0x8c4   : > { %2888 = vmatprep.subr.bf16.mxu1 %v3581_v52 }
 0x8c7   : > { %2889 = vmatpush3.bf16.msra.mxu1 %v3226_v60 }
 0x982   : > { %v2291_v0 = vpop.f32.mrf.mxu1 }
 0x983   : > { %v2292_v13 = vadd.f32 %v2736_v18, %v2291_v0 }
 0x984   : > { %v2884_v24 = vpop.f32.mrf.mxu1 }
 0x985   : > { %v4280_v26 = vadd.f32 %v2292_v13, %v3928_v61 }
 0x986   : > { %v2294_v27 = vpop.f32.mrf.mxu1 }
 0x987   : > { %v2300_v28 = vsel %vm1328_vm3, %v4280_v26, 0.0 }
 0x988   : > { %2301 = vadd.xlane.f32.xlu1 %v2300_v28  ;;  %v2885_v12 = vpop.f32.mrf.mxu1 }
 0xa11   : > { %v2302_v29 = vpop.xlane.xlu1 %2301 }
 0xa12   : > { %v2303_v58 = vmul.f32 0.03125, %v2302_v29 }
 0xa14   : > { %v2304_v59 = vsub.f32 %v4280_v26, %v2303_v58 }
 0xa16   : > { %v2305_v55 = vmul.f32 %v2304_v59, %v2304_v59 }
 0xa18   : > { %v2306_v56 = vsel %vm1328_vm3, %v2305_v55, 0.0 }
 0xa19   : > { %2307 = vadd.xlane.f32.xlu0 %v2306_v56 }
 0xaa2   : > { %v2308_v61 = vpop.xlane.xlu0 %2307 }
 0xaa3   : > { %v2309_v62 = vmul.f32 0.03125, %v2308_v61 }
 0xaa5   : > { %v2310_v63 = vadd.f32 1e-05, %v2309_v62 }
 0xaa7   : > { %3243 = vrsqrt.f32 %v2310_v63 }
 0xab4   : > { %v3244_v2 = vpop.eup %3243 }
 0xab5   : > { %v2312_v11 = vmul.f32 %v3244_v2, %v2304_v59 }
 0xab7   : > { %v2319_v39 = vmul.f32 %v2740_v3, %v2312_v11 }
 0xab9   : > { %v2326_v44 = vadd.f32 %v2741_v1, %v2319_v39 }
 0xabb   : > { %v2327_v51 = vpack.c.bf16 %v2326_v44, %v2326_v44 }
 0xabd   : > { %2891 = vmatmul.mubr.msk.bf16.vlgmr.msra.gmra.mxu1 %vm1328_vm3, %v2327_v51 }
 0xb7d   : > { %v2388_v54 = vpop.f32.mrf.mxu1 }
 0xb7e   : > { %v2389_v37 = vadd.f32 %v2742_v36, %v2388_v54 }
 0xb7f   : > { %v2892_v38 = vpop.f32.mrf.mxu1 }
 0xb80   : > { %v2395_v41 = vmul.f32 0.044715, %v2389_v37  ;;  %v2394_v45 = vmul.f32 0.5, %v2389_v37 }
 0xb81   : > { %v2391_v42 = vpop.f32.mrf.mxu1 }
 0xb82   : > { %v2396_v40 = vmul.f32 %v2395_v41, %v2389_v37 }
 0xb83   : > { %v2893_v43 = vpop.f32.mrf.mxu1 }
 0xb84   : > { %v2397_v47 = vmul.f32 %v2396_v40, %v2389_v37 }
 0xb86   : > { %v2398_v48 = vadd.f32 %v2397_v47, %v2389_v37 }
 0xb88   : > { %v2399_v49 = vmul.f32 0.7978846, %v2398_v48 }
 0xb8a   : > { %3245 = vtanh.f32 %v2399_v49 }
 0xb97   : > { %v3246_v50 = vpop.eup %3245 }
 0xb98   : > { %v2401_v22 = vadd.f32 1.0, %v3246_v50 }
 0xb9a   : > { %v2402_v52 = vmul.f32 %v2401_v22, %v2394_v45 }
 0xb9c   : > { %v2403_v17 = vpack.c.bf16 %v2402_v52, %v2402_v52 }
 0xb9e   : > { %2911 = vmatmul.mubr.bf16.vlgmr.msra.gmra.mxu0 %v2403_v17 }
 0xc5e   : > { %v2509_v4 = vpop.f32.mrf.mxu0 }
 0xc5f   : > { %v2510_v21 = vadd.f32 %v2746_v53, %v2509_v4 }
 0xc60   : > { %v2912_v16 = vpop.f32.mrf.mxu0 }
 0xc61   : > { %v2515_v46 = vadd.f32 %v2510_v21, %v4280_v26 }
 0xc62   : > { %v2512_v6 = vpop.f32.mrf.mxu0 }
 0xc63   : > { %2516 = vst.msk [vmem:[%s529_s30] sm:$0xff] %vm1328_vm3, %v2515_v46 }
 0xc64   : > { %v2913_v7 = vpop.f32.mrf.mxu0 }
 0xc65   : > { %3312 = shalt.err (!%p3309_p7)
}
 0xc66   : > { %s3313_s20 = scalar_lea.hbm %s4336_s0, 128  ;;  %s3317_s13 = scalar_lea.hbm %s4459_s15, 512 }
 0xc67   : > { %p3314_p9 = scmp.ne.s32.totalorder %s4336_s0, %s3313_s20  ;;  %p3318_p12 = scmp.lt.s32.totalorder %s4336_s0, %s4459_s15 }
 0xc68   : > { %p3319_p1 = scmp.lt.s32.totalorder %s3317_s13, %s3313_s20 }
 0xc69   : > { %p3315_p0 = pnand %p3314_p9, %p3727_p3 }
 0xc6a   : > { %p3320_p11 = por %p3319_p1, %p3318_p12 }
 0xc6b   : > { %p3316_p10 = pneg %p3315_p0 }
 0xc6d   : > { %p3321_p13 = pnand %p3320_p11, %p3316_p10 }
 0xc6f   : > { %3324 = shalt.err (!%p3321_p13)
}
 0xc70   : > { %2922 = dma.vmem_to_hbm [thread:$0]  (%p3727_p3), %s4338_s28, 128, %s4336_s0, %s2518_s22  }
 0xc71 PF: > { %s4461_s21 = sld [smem:[#allocation13_spill]]  ;;  %p2939_p2 = scmp.ge.s32.totalorder %s3483_s25, 2 }
 0xc73   : > { %p2932_p4 = pnand %p2939_p2, %p3736_p8 }
 0xc75   : > { %p2933_p5 = pneg %p2932_p4 }
 0xc77   : > { %s2545_s14 = sand.u32 1, %s4461_s21  }
 0xc78   : > { %s2546_s23 = scalar_lea.sflag [#allocation6], %s2545_s14 }
 0xc79   : > { %3450 = dma.done.wait (%p2933_p5), %s2546_s23, 128  }
 0xc7a   : > { %3452 = vsyncadd (%p2933_p5), %s2546_s23, 4294967168  ;;  %s30_s25 = sadd.s32 1, %s3483_s25   ;;  %s4463_s17 = sld [smem:[#allocation14_spill]] }
 0xc7b   : > { %p27_p6 = scmp.ge.s32.totalorder %s30_s25, 6   ;;  %s4464_s20 = sld [smem:[#allocation20_spill]] }
 0xc7c   : > { %s4465_s21 = sld [smem:[#allocation15_spill]]  ;;  %s4469_s18 = smov %s3459_s19 }
 0xc7d   : > { %s4466_s22 = sld [smem:[#allocation16_spill]]  ;;  %29 = sbr.rel (!%p27_p6) target bundleno = 12 (0xc), region = 149 }
 0xc7e   : > { %s4467_s23 = sld [smem:[#allocation17_spill]] }
 0xc7f   : > { %s4468_s24 = sld [smem:[#allocation18_spill]] }
 0xc80   : > { %s4470_s19 = smov %s4463_s17 }
 0xc82   :  { %2551 = vsyncpa [#allocation5], 1 }
 0xc83   :  { %2553 = vsyncpa [#allocation5 + $0x1], 1 }
 0xc84   :  { %2554 = vsyncpa [#allocation8], 1 }
 0xc85   :  { %2555 = vsyncpa [#allocation6], 1 }
 0xc86   :  { %2557 = vsyncpa [#allocation6 + $0x1], 1 }

</bundles_post_ra>
